<compile_context>
chip_gen: v5e
topology: v5e:2x2
jax: 0.10.0
libtpu: 0.0.40
codegen_flags: <defaults>
</compile_context>

<pallas_src>
import functools
import math

import jax
import jax.numpy as jnp
from jax.experimental import pallas as pl
from jax.experimental.pallas import tpu as pltpu


# ----------------------------------------------------------------------------
# Fused kernel: grid = (batch_blocks, num_layers). One batch block per outer
# grid step; the inner ("arbitrary") grid axis walks the encoder layers while
# the activations live in a VMEM scratch accumulator.
# ----------------------------------------------------------------------------
def fused_encoder_kernel(
    x_ref,        # (Bb, S, D)  f32   input activations (read at layer 0 only)
    mask_ref,     # (Bb, 1, S)  f32   additive key-padding bias (0 or -1e30)
    ln1w_ref, ln1b_ref,          # (1, 1, D) f32
    wqkv_ref, bqkv_ref,          # (1, D, 3D) bf16, (1, 1, 3D) f32  (scale folded into q)
    wo_ref, bo_ref,              # (1, D, D)  bf16, (1, 1, D)  f32
    ln2w_ref, ln2b_ref,          # (1, 1, D) f32
    w1_ref, b1_ref,              # (1, D, 2D) bf16, (1, 1, 2D) f32
    w2_ref, b2_ref,              # (1, 2D, D) bf16, (1, 1, D)  f32
    out_ref,      # (Bb, S, D)  f32   (written at the last layer only)
    x_scr,        # VMEM scratch (Bb*S, D) f32 — carried across layer axis
    *, num_heads: int,
):
    layer = pl.program_id(1)
    n_layers = pl.num_programs(1)

    Bb, S, D = x_ref.shape
    H = num_heads
    Dh = D // H
    eps = 1e-5

    # load activations into the VMEM carry at the first layer
    @pl.when(layer == 0)
    def _():
        x_scr[...] = x_ref[...].reshape(Bb * S, D)

    x = x_scr[...]                                           # (Bb*S, D) f32

    def layernorm(v, w_ref, b_ref):
        mu = jnp.mean(v, axis=-1, keepdims=True)
        var = jnp.mean((v - mu) ** 2, axis=-1, keepdims=True)
        return (v - mu) * jax.lax.rsqrt(var + eps) * w_ref[0] + b_ref[0]

    # ---- self-attention block (pre-norm) ------------------------------------
    ln1 = layernorm(x, ln1w_ref, ln1b_ref)
    # packed QKV projection; weights pre-transposed (D, 3D), bf16, f32 accum
    qkv = jnp.dot(ln1.astype(jnp.bfloat16), wqkv_ref[0],
                  preferred_element_type=jnp.float32) + bqkv_ref[0]   # (Bb*S, 3D)

    mask = mask_ref[...]                                     # (Bb, 1, S)

    head_outs = []
    for h in range(H):                                       # static unroll over heads
        q = qkv[:, h * Dh:(h + 1) * Dh].reshape(Bb, S, Dh)   # scale already in Wq
        k = qkv[:, D + h * Dh:D + (h + 1) * Dh].reshape(Bb, S, Dh)
        v = qkv[:, 2 * D + h * Dh:2 * D + (h + 1) * Dh].reshape(Bb, S, Dh)
        s = jnp.einsum("bqd,bkd->bqk", q, k,
                       preferred_element_type=jnp.float32) + mask     # (Bb, S, S)
        m = jnp.max(s, axis=-1, keepdims=True)
        p = jnp.exp(s - m)
        p = p * pl.reciprocal(jnp.sum(p, axis=-1, keepdims=True), approx=True)
        o = jnp.einsum("bqk,bkd->bqd", p, v,
                       preferred_element_type=jnp.float32)            # (Bb, S, Dh)
        head_outs.append(o.reshape(Bb * S, Dh))
    attn = jnp.concatenate(head_outs, axis=-1)                        # (Bb*S, D)
    attn = jnp.dot(attn.astype(jnp.bfloat16), wo_ref[0],
                   preferred_element_type=jnp.float32) + bo_ref[0]
    x = x + attn                            # dropout1 is identity in eval mode

    # ---- feed-forward block (pre-norm) --------------------------------------
    ln2 = layernorm(x, ln2w_ref, ln2b_ref)
    h1 = jnp.dot(ln2.astype(jnp.bfloat16), w1_ref[0],
                 preferred_element_type=jnp.float32) + b1_ref[0]      # (Bb*S, 2D)
    # exact GELU (PyTorch F.gelu default): 0.5*x*(1+erf(x/sqrt(2)))
    g = 0.5 * h1 * (1.0 + jax.lax.erf(h1 * (1.0 / math.sqrt(2.0))))
    ff = jnp.dot(g.astype(jnp.bfloat16), w2_ref[0],
                 preferred_element_type=jnp.float32) + b2_ref[0]      # (Bb*S, D)
    x = x + ff                              # dropout2 is identity in eval mode

    x_scr[...] = x                          # carry to next layer

    @pl.when(layer == n_layers - 1)
    def _():
        out_ref[...] = x.reshape(Bb, S, D)


# ----------------------------------------------------------------------------
# Host-side helpers: weight packing / layout and the pallas_call wrapper.
# ----------------------------------------------------------------------------
_W_NAMES = ["ln1_w", "ln1_b", "w_qkv", "b_qkv", "w_o", "b_o",
            "ln2_w", "ln2_b", "w_ff1", "b_ff1", "w_ff2", "b_ff2"]


def _pack_params_for_kernel(layer_params, num_heads):
    """PyTorch-layout params -> stacked, pre-transposed, bf16 kernel params."""
    D = layer_params[0]["w_o"].shape[0]
    Dh = D // num_heads
    scale = 1.0 / math.sqrt(Dh)
    # fold attention scale 1/sqrt(Dh) into the q slice of the packed projection
    q_scale = jnp.concatenate(
        [jnp.full((D,), scale, jnp.float32), jnp.ones((2 * D,), jnp.float32)])

    packed = []
    for p in layer_params:
        d_ff = p["w_ff1"].shape[0]
        packed.append(dict(
            ln1_w=p["ln1_w"].reshape(1, D).astype(jnp.float32),
            ln1_b=p["ln1_b"].reshape(1, D).astype(jnp.float32),
            w_qkv=(p["w_qkv"].T * q_scale[None, :]).astype(jnp.bfloat16),  # (D, 3D)
            b_qkv=(p["b_qkv"] * q_scale).reshape(1, 3 * D).astype(jnp.float32),
            w_o=p["w_o"].T.astype(jnp.bfloat16),                            # (D, D)
            b_o=p["b_o"].reshape(1, D).astype(jnp.float32),
            ln2_w=p["ln2_w"].reshape(1, D).astype(jnp.float32),
            ln2_b=p["ln2_b"].reshape(1, D).astype(jnp.float32),
            w_ff1=p["w_ff1"].T.astype(jnp.bfloat16),                        # (D, 2D)
            b_ff1=p["b_ff1"].reshape(1, d_ff).astype(jnp.float32),
            w_ff2=p["w_ff2"].T.astype(jnp.bfloat16),                        # (2D, D)
            b_ff2=p["b_ff2"].reshape(1, D).astype(jnp.float32),
        ))
    # stack all layers along a leading layer axis
    return {n: jnp.stack([q[n] for q in packed], axis=0) for n in _W_NAMES}


def _pick_block_batch(B, S, target_rows=256):
    """Smallest divisor of B giving >= target_rows tokens per block (else B)."""
    for bb in range(1, B + 1):
        if B % bb == 0 and bb * S >= target_rows:
            return bb
    return B


def device_feature_transformer(x, layer_params, num_heads, key_padding_mask=None):
    """Forward pass of DeviceFeatureTransformer (eval mode). x: (B, S, D) f32."""
    x = x.astype(jnp.float32)
    B, S, D = x.shape
    L = len(layer_params)

    if key_padding_mask is None:
        mask_bias = jnp.zeros((B, 1, S), jnp.float32)
    else:
        # True = padded key -> large finite negative bias (avoids NaN if a
        # query row is fully masked, unlike -inf).
        mask_bias = jnp.where(key_padding_mask, jnp.float32(-1e30),
                              jnp.float32(0.0)).reshape(B, 1, S)

    w = _pack_params_for_kernel(layer_params, num_heads)
    weights = [w[n] for n in _W_NAMES]

    Bb = _pick_block_batch(B, S)
    grid = (B // Bb, L)

    in_specs = [
        pl.BlockSpec((Bb, S, D), lambda b, l: (b, 0, 0)),   # activations
        pl.BlockSpec((Bb, 1, S), lambda b, l: (b, 0, 0)),   # mask bias
    ] + [pl.BlockSpec((1,) + arr.shape[1:], lambda b, l: (l, 0, 0))
         for arr in weights]                                # per-layer weights

    kernel = functools.partial(fused_encoder_kernel, num_heads=num_heads)
    return pl.pallas_call(
        kernel,
        out_shape=jax.ShapeDtypeStruct((B, S, D), jnp.float32),
        grid=grid,
        in_specs=in_specs,
        out_specs=pl.BlockSpec((Bb, S, D), lambda b, l: (b, 0, 0)),
        scratch_shapes=[pltpu.VMEM((Bb * S, D), jnp.float32)],
        compiler_params=pltpu.CompilerParams(
            dimension_semantics=("parallel", "arbitrary")),
    )(x, mask_bias, *weights)


# ----------------------------------------------------------------------------
# Parameter construction (deterministic, synthetic; PyTorch-native layouts)
# ----------------------------------------------------------------------------
def init_layer_params(key, d_model):
    ks = jax.random.split(key, 8)
    sc = 0.02
    d_ff = 2 * d_model
    return {
        "ln1_w": jnp.ones((d_model,), jnp.float32),
        "ln1_b": jnp.zeros((d_model,), jnp.float32),
        "w_qkv": sc * jax.random.normal(ks[0], (3 * d_model, d_model), jnp.float32),
        "b_qkv": sc * jax.random.normal(ks[1], (3 * d_model,), jnp.float32),
        "w_o":   sc * jax.random.normal(ks[2], (d_model, d_model), jnp.float32),
        "b_o":   sc * jax.random.normal(ks[3], (d_model,), jnp.float32),
        "ln2_w": jnp.ones((d_model,), jnp.float32),
        "ln2_b": jnp.zeros((d_model,), jnp.float32),
        "w_ff1": sc * jax.random.normal(ks[4], (d_ff, d_model), jnp.float32),
        "b_ff1": sc * jax.random.normal(ks[5], (d_ff,), jnp.float32),
        "w_ff2": sc * jax.random.normal(ks[6], (d_model, d_ff), jnp.float32),
        "b_ff2": sc * jax.random.normal(ks[7], (d_model,), jnp.float32),
    }


# ----------------------------------------------------------------------------
# Pure-JAX f32 reference (for a sanity check against the kernel)
# ----------------------------------------------------------------------------
def _reference_layer(x, mask_bias, p, num_heads):
    B, S, D = x.shape
    Dh = D // num_heads
    eps = 1e-5

    def ln(v, w, b):
        mu = v.mean(-1, keepdims=True)
        var = ((v - mu) ** 2).mean(-1, keepdims=True)
        return (v - mu) / jnp.sqrt(var + eps) * w + b

    l1 = ln(x, p["ln1_w"], p["ln1_b"])
    qkv = l1 @ p["w_qkv"].T + p["b_qkv"]
    q, k, v = jnp.split(qkv, 3, axis=-1)
    q = q.reshape(B, S, num_heads, Dh).transpose(0, 2, 1, 3)
    k = k.reshape(B, S, num_heads, Dh).transpose(0, 2, 1, 3)
    v = v.reshape(B, S, num_heads, Dh).transpose(0, 2, 1, 3)
    s = (q @ k.transpose(0, 1, 3, 2)) / math.sqrt(Dh) + mask_bias[:, None, :, :]
    a = jax.nn.softmax(s, axis=-1)
    o = (a @ v).transpose(0, 2, 1, 3).reshape(B, S, D)
    x = x + (o @ p["w_o"].T + p["b_o"])
    l2 = ln(x, p["ln2_w"], p["ln2_b"])
    h = l2 @ p["w_ff1"].T + p["b_ff1"]
    h = 0.5 * h * (1.0 + jax.lax.erf(h / math.sqrt(2.0)))
    return x + (h @ p["w_ff2"].T + p["b_ff2"])


def _reference_forward(x, layer_params, num_heads, mask_bias):
    out = x
    for p in layer_params:
        out = _reference_layer(out, mask_bias, p, num_heads)
    return out


if __name__ == "__main__":
    # Small shapes consistent with the module (feat_dim multiple of 128 for
    # lane alignment; num_heads=4, num_layers=2 as in __init__).
    feat_dim, num_heads, num_layers = 128, 4, 2
    batch, seq = 2, 8

    key = jax.random.PRNGKey(0)
    kx, *kls = jax.random.split(key, 1 + num_layers)
    x = jax.random.normal(kx, (batch, seq, feat_dim), jnp.float32)
    layer_params = [init_layer_params(k, feat_dim) for k in kls]

    # ---- no padding mask -----------------------------------------------------
    out = device_feature_transformer(x, layer_params, num_heads,
                                     key_padding_mask=None)
    out = jax.block_until_ready(out)
    ref = _reference_forward(x, layer_params, num_heads,
                             jnp.zeros((batch, 1, seq), jnp.float32))
    assert out.shape == (batch, seq, feat_dim)
    # tolerance accounts for intentional bf16 matmul operands (f32 accumulate)
    assert jnp.allclose(out, ref, atol=2e-2, rtol=2e-2), "mismatch (no mask)"

    # ---- with a key-padding mask (True = padded position) ---------------------
    kpm = jnp.zeros((batch, seq), bool).at[1, seq - 2:].set(True)
    out_m = device_feature_transformer(x, layer_params, num_heads,
                                       key_padding_mask=kpm)
    out_m = jax.block_until_ready(out_m)
    mb = jnp.where(kpm, jnp.float32(-1e30),
                   jnp.float32(0.0)).reshape(batch, 1, seq)
    ref_m = _reference_forward(x, layer_params, num_heads, mb)
    assert jnp.allclose(out_m, ref_m, atol=2e-2, rtol=2e-2), "mismatch (masked)"

    print("KERNEL_OK")
</pallas_src>

<mosaic_0001>
module attributes {stable_mosaic.version = 11 : i64} {
  func.func @fused_encoder_kernel(%arg0: i32, %arg1: i32, %arg2: memref<2x8x128xf32, #tpu.memory_space<vmem>>, %arg3: memref<2x1x8xf32, #tpu.memory_space<vmem>>, %arg4: memref<1x1x128xf32, #tpu.memory_space<vmem>>, %arg5: memref<1x1x128xf32, #tpu.memory_space<vmem>>, %arg6: memref<1x128x384xbf16, #tpu.memory_space<vmem>>, %arg7: memref<1x1x384xf32, #tpu.memory_space<vmem>>, %arg8: memref<1x128x128xbf16, #tpu.memory_space<vmem>>, %arg9: memref<1x1x128xf32, #tpu.memory_space<vmem>>, %arg10: memref<1x1x128xf32, #tpu.memory_space<vmem>>, %arg11: memref<1x1x128xf32, #tpu.memory_space<vmem>>, %arg12: memref<1x128x256xbf16, #tpu.memory_space<vmem>>, %arg13: memref<1x1x256xf32, #tpu.memory_space<vmem>>, %arg14: memref<1x256x128xbf16, #tpu.memory_space<vmem>>, %arg15: memref<1x1x128xf32, #tpu.memory_space<vmem>>, %arg16: memref<2x8x128xf32, #tpu.memory_space<vmem>>, %arg17: memref<16x128xf32, #tpu.memory_space<vmem>>) attributes {dimension_semantics = [#tpu.dimension_semantics<parallel>, #tpu.dimension_semantics<arbitrary>], iteration_bounds = array<i64: 1, 2>, scalar_prefetch = 0 : i64, scratch_operands = 1 : i64, tpu.core_type = #tpu.core_type<tc>, window_params = [{transform_indices = @transform_0, window_bounds = array<i64: 2, 8, 128>}, {transform_indices = @transform_1, window_bounds = array<i64: 2, 1, 8>}, {transform_indices = @transform_2, window_bounds = array<i64: 1, 1, 128>}, {transform_indices = @transform_3, window_bounds = array<i64: 1, 1, 128>}, {transform_indices = @transform_4, window_bounds = array<i64: 1, 128, 384>}, {transform_indices = @transform_5, window_bounds = array<i64: 1, 1, 384>}, {transform_indices = @transform_6, window_bounds = array<i64: 1, 128, 128>}, {transform_indices = @transform_7, window_bounds = array<i64: 1, 1, 128>}, {transform_indices = @transform_8, window_bounds = array<i64: 1, 1, 128>}, {transform_indices = @transform_9, window_bounds = array<i64: 1, 1, 128>}, {transform_indices = @transform_10, window_bounds = array<i64: 1, 128, 256>}, {transform_indices = @transform_11, window_bounds = array<i64: 1, 1, 256>}, {transform_indices = @transform_12, window_bounds = array<i64: 1, 256, 128>}, {transform_indices = @transform_13, window_bounds = array<i64: 1, 1, 128>}, {transform_indices = @transform_14, window_bounds = array<i64: 2, 8, 128>}]} {
    %c0_i32 = arith.constant 0 : i32
    %0 = arith.cmpi eq, %arg1, %c0_i32 : i32
    %1 = arith.extui %0 : i1 to i32
    %c0_i32_0 = arith.constant 0 : i32
    %2 = arith.cmpi ne, %1, %c0_i32_0 : i32
    scf.if %2 {
      %c0_76 = arith.constant 0 : index
      %c0_77 = arith.constant 0 : index
      %c0_78 = arith.constant 0 : index
      %188 = vector.load %arg2[%c0_76, %c0_77, %c0_78] : memref<2x8x128xf32, #tpu.memory_space<vmem>>, vector<2x8x128xf32>
      %189 = vector.shape_cast %188 : vector<2x8x128xf32> to vector<16x128xf32>
      %c0_79 = arith.constant 0 : index
      %c0_80 = arith.constant 0 : index
      %190 = vector.load %arg17[%c0_79, %c0_80] : memref<16x128xf32, #tpu.memory_space<vmem>>, vector<16x128xf32>
      tpu.vector_store %arg17[%c0_79, %c0_80], %189 {strides = array<i32>} : memref<16x128xf32, #tpu.memory_space<vmem>>, vector<16x128xf32>,
    } else {
    }
    %c0 = arith.constant 0 : index
    %c0_1 = arith.constant 0 : index
    %3 = vector.load %arg17[%c0, %c0_1] : memref<16x128xf32, #tpu.memory_space<vmem>>, vector<16x128xf32>
    %cst = arith.constant dense<0.000000e+00> : vector<16xf32>
    %4 = vector.multi_reduction <add>, %3, %cst [1] : vector<16x128xf32> to vector<16xf32>
    %5 = vector.shape_cast %4 : vector<16xf32> to vector<16x1xf32>
    %cst_2 = arith.constant 1.280000e+02 : f32
    %6 = vector.broadcast %cst_2 : f32 to vector<16x1xf32>
    %7 = arith.divf %5, %6 : vector<16x1xf32>
    %8 = vector.broadcast %7 : vector<16x1xf32> to vector<16x128xf32>
    %9 = arith.subf %3, %8 : vector<16x128xf32>
    %10 = arith.mulf %9, %9 : vector<16x128xf32>
    %cst_3 = arith.constant dense<0.000000e+00> : vector<16xf32>
    %11 = vector.multi_reduction <add>, %10, %cst_3 [1] : vector<16x128xf32> to vector<16xf32>
    %12 = vector.shape_cast %11 : vector<16xf32> to vector<16x1xf32>
    %cst_4 = arith.constant 1.280000e+02 : f32
    %13 = vector.broadcast %cst_4 : f32 to vector<16x1xf32>
    %14 = arith.divf %12, %13 : vector<16x1xf32>
    %15 = vector.broadcast %7 : vector<16x1xf32> to vector<16x128xf32>
    %16 = arith.subf %3, %15 : vector<16x128xf32>
    %cst_5 = arith.constant 9.99999974E-6 : f32
    %17 = vector.broadcast %cst_5 : f32 to vector<16x1xf32>
    %18 = arith.addf %14, %17 : vector<16x1xf32>
    %19 = math.rsqrt %18 : vector<16x1xf32>
    %20 = vector.broadcast %19 : vector<16x1xf32> to vector<16x128xf32>
    %21 = arith.mulf %16, %20 : vector<16x128xf32>
    %c0_6 = arith.constant 0 : index
    %c0_7 = arith.constant 0 : index
    %c0_8 = arith.constant 0 : index
    %22 = vector.load %arg4[%c0_6, %c0_7, %c0_8] : memref<1x1x128xf32, #tpu.memory_space<vmem>>, vector<1x1x128xf32>
    %23 = vector.shape_cast %22 : vector<1x1x128xf32> to vector<1x128xf32>
    %24 = vector.broadcast %23 : vector<1x128xf32> to vector<16x128xf32>
    %25 = arith.mulf %21, %24 : vector<16x128xf32>
    %c0_9 = arith.constant 0 : index
    %c0_10 = arith.constant 0 : index
    %c0_11 = arith.constant 0 : index
    %26 = vector.load %arg5[%c0_9, %c0_10, %c0_11] : memref<1x1x128xf32, #tpu.memory_space<vmem>>, vector<1x1x128xf32>
    %27 = vector.shape_cast %26 : vector<1x1x128xf32> to vector<1x128xf32>
    %28 = vector.broadcast %27 : vector<1x128xf32> to vector<16x128xf32>
    %29 = arith.addf %25, %28 : vector<16x128xf32>
    %30 = arith.truncf %29 : vector<16x128xf32> to vector<16x128xbf16>
    %c0_12 = arith.constant 0 : index
    %c0_13 = arith.constant 0 : index
    %c0_14 = arith.constant 0 : index
    %31 = vector.load %arg6[%c0_12, %c0_13, %c0_14] : memref<1x128x384xbf16, #tpu.memory_space<vmem>>, vector<1x128x384xbf16>
    %32 = vector.shape_cast %31 : vector<1x128x384xbf16> to vector<128x384xbf16>
    %cst_15 = arith.constant dense<0.000000e+00> : vector<16x384xf32>
    %33 = tpu.matmul %30, %32, %cst_15 {dimension_numbers = #tpu.dot_dimension_numbers<[1], [0], [0], [1], [0, 0, 1, 1], [], []>} : vector<16x128xbf16>, vector<128x384xbf16>, vector<16x384xf32> -> vector<16x384xf32>
    %c0_16 = arith.constant 0 : index
    %c0_17 = arith.constant 0 : index
    %c0_18 = arith.constant 0 : index
    %34 = vector.load %arg7[%c0_16, %c0_17, %c0_18] : memref<1x1x384xf32, #tpu.memory_space<vmem>>, vector<1x1x384xf32>
    %35 = vector.shape_cast %34 : vector<1x1x384xf32> to vector<1x384xf32>
    %36 = vector.broadcast %35 : vector<1x384xf32> to vector<16x384xf32>
    %37 = arith.addf %33, %36 : vector<16x384xf32>
    %c0_19 = arith.constant 0 : index
    %c0_20 = arith.constant 0 : index
    %c0_21 = arith.constant 0 : index
    %38 = vector.load %arg3[%c0_19, %c0_20, %c0_21] : memref<2x1x8xf32, #tpu.memory_space<vmem>>, vector<2x1x8xf32>
    %39 = vector.extract_strided_slice %37 {offsets = [0, 0], sizes = [16, 32], strides = [1, 1]} : vector<16x384xf32> to vector<16x32xf32>
    %40 = vector.shape_cast %39 : vector<16x32xf32> to vector<2x8x32xf32>
    %41 = vector.extract_strided_slice %37 {offsets = [0, 128], sizes = [16, 32], strides = [1, 1]} : vector<16x384xf32> to vector<16x32xf32>
    %42 = vector.shape_cast %41 : vector<16x32xf32> to vector<2x8x32xf32>
    %43 = vector.extract_strided_slice %37 {offsets = [0, 256], sizes = [16, 32], strides = [1, 1]} : vector<16x384xf32> to vector<16x32xf32>
    %44 = vector.shape_cast %43 : vector<16x32xf32> to vector<2x8x32xf32>
    "tpu.trace_start"() <{level = 10 : i32, message = "bqd,bkd->bqk"}> : () -> ()
    %cst_22 = arith.constant dense<0.000000e+00> : vector<2x8x8xf32>
    %45 = tpu.matmul %40, %42, %cst_22 {dimension_numbers = #tpu.dot_dimension_numbers<[2], [2], [1], [1], [0, 0, 0, 1, 1, 1], [0], [0]>} : vector<2x8x32xf32>, vector<2x8x32xf32>, vector<2x8x8xf32> -> vector<2x8x8xf32>
    "tpu.trace_stop"() : () -> ()
    %46 = vector.broadcast %38 : vector<2x1x8xf32> to vector<2x8x8xf32>
    %47 = arith.addf %45, %46 : vector<2x8x8xf32>
    %cst_23 = arith.constant dense<0xFF800000> : vector<2x8xf32>
    %48 = vector.multi_reduction <maximumf>, %47, %cst_23 [2] : vector<2x8x8xf32> to vector<2x8xf32>
    %49 = vector.shape_cast %48 : vector<2x8xf32> to vector<2x8x1xf32>
    %50 = vector.broadcast %49 : vector<2x8x1xf32> to vector<2x8x8xf32>
    %51 = arith.subf %47, %50 : vector<2x8x8xf32>
    %52 = math.exp %51 : vector<2x8x8xf32>
    %cst_24 = arith.constant dense<0.000000e+00> : vector<2x8xf32>
    %53 = vector.multi_reduction <add>, %52, %cst_24 [2] : vector<2x8x8xf32> to vector<2x8xf32>
    %54 = vector.shape_cast %53 : vector<2x8xf32> to vector<2x8x1xf32>
    %55 = tpu.reciprocal %54 {approx = true} : vector<2x8x1xf32> -> vector<2x8x1xf32>
    %56 = vector.broadcast %55 : vector<2x8x1xf32> to vector<2x8x8xf32>
    %57 = arith.mulf %52, %56 : vector<2x8x8xf32>
    "tpu.trace_start"() <{level = 10 : i32, message = "bqk,bkd->bqd"}> : () -> ()
    %cst_25 = arith.constant dense<0.000000e+00> : vector<2x8x32xf32>
    %58 = tpu.matmul %57, %44, %cst_25 {dimension_numbers = #tpu.dot_dimension_numbers<[2], [1], [1], [2], [0, 0, 0, 1, 1, 2], [0], [0]>} : vector<2x8x8xf32>, vector<2x8x32xf32>, vector<2x8x32xf32> -> vector<2x8x32xf32>
    "tpu.trace_stop"() : () -> ()
    %59 = vector.shape_cast %58 : vector<2x8x32xf32> to vector<16x32xf32>
    %60 = vector.extract_strided_slice %37 {offsets = [0, 32], sizes = [16, 32], strides = [1, 1]} : vector<16x384xf32> to vector<16x32xf32>
    %61 = vector.shape_cast %60 : vector<16x32xf32> to vector<2x8x32xf32>
    %62 = vector.extract_strided_slice %37 {offsets = [0, 160], sizes = [16, 32], strides = [1, 1]} : vector<16x384xf32> to vector<16x32xf32>
    %63 = vector.shape_cast %62 : vector<16x32xf32> to vector<2x8x32xf32>
    %64 = vector.extract_strided_slice %37 {offsets = [0, 288], sizes = [16, 32], strides = [1, 1]} : vector<16x384xf32> to vector<16x32xf32>
    %65 = vector.shape_cast %64 : vector<16x32xf32> to vector<2x8x32xf32>
    "tpu.trace_start"() <{level = 10 : i32, message = "bqd,bkd->bqk"}> : () -> ()
    %cst_26 = arith.constant dense<0.000000e+00> : vector<2x8x8xf32>
    %66 = tpu.matmul %61, %63, %cst_26 {dimension_numbers = #tpu.dot_dimension_numbers<[2], [2], [1], [1], [0, 0, 0, 1, 1, 1], [0], [0]>} : vector<2x8x32xf32>, vector<2x8x32xf32>, vector<2x8x8xf32> -> vector<2x8x8xf32>
    "tpu.trace_stop"() : () -> ()
    %67 = vector.broadcast %38 : vector<2x1x8xf32> to vector<2x8x8xf32>
    %68 = arith.addf %66, %67 : vector<2x8x8xf32>
    %cst_27 = arith.constant dense<0xFF800000> : vector<2x8xf32>
    %69 = vector.multi_reduction <maximumf>, %68, %cst_27 [2] : vector<2x8x8xf32> to vector<2x8xf32>
    %70 = vector.shape_cast %69 : vector<2x8xf32> to vector<2x8x1xf32>
    %71 = vector.broadcast %70 : vector<2x8x1xf32> to vector<2x8x8xf32>
    %72 = arith.subf %68, %71 : vector<2x8x8xf32>
    %73 = math.exp %72 : vector<2x8x8xf32>
    %cst_28 = arith.constant dense<0.000000e+00> : vector<2x8xf32>
    %74 = vector.multi_reduction <add>, %73, %cst_28 [2] : vector<2x8x8xf32> to vector<2x8xf32>
    %75 = vector.shape_cast %74 : vector<2x8xf32> to vector<2x8x1xf32>
    %76 = tpu.reciprocal %75 {approx = true} : vector<2x8x1xf32> -> vector<2x8x1xf32>
    %77 = vector.broadcast %76 : vector<2x8x1xf32> to vector<2x8x8xf32>
    %78 = arith.mulf %73, %77 : vector<2x8x8xf32>
    "tpu.trace_start"() <{level = 10 : i32, message = "bqk,bkd->bqd"}> : () -> ()
    %cst_29 = arith.constant dense<0.000000e+00> : vector<2x8x32xf32>
    %79 = tpu.matmul %78, %65, %cst_29 {dimension_numbers = #tpu.dot_dimension_numbers<[2], [1], [1], [2], [0, 0, 0, 1, 1, 2], [0], [0]>} : vector<2x8x8xf32>, vector<2x8x32xf32>, vector<2x8x32xf32> -> vector<2x8x32xf32>
    "tpu.trace_stop"() : () -> ()
    %80 = vector.shape_cast %79 : vector<2x8x32xf32> to vector<16x32xf32>
    %81 = vector.extract_strided_slice %37 {offsets = [0, 64], sizes = [16, 32], strides = [1, 1]} : vector<16x384xf32> to vector<16x32xf32>
    %82 = vector.shape_cast %81 : vector<16x32xf32> to vector<2x8x32xf32>
    %83 = vector.extract_strided_slice %37 {offsets = [0, 192], sizes = [16, 32], strides = [1, 1]} : vector<16x384xf32> to vector<16x32xf32>
    %84 = vector.shape_cast %83 : vector<16x32xf32> to vector<2x8x32xf32>
    %85 = vector.extract_strided_slice %37 {offsets = [0, 320], sizes = [16, 32], strides = [1, 1]} : vector<16x384xf32> to vector<16x32xf32>
    %86 = vector.shape_cast %85 : vector<16x32xf32> to vector<2x8x32xf32>
    "tpu.trace_start"() <{level = 10 : i32, message = "bqd,bkd->bqk"}> : () -> ()
    %cst_30 = arith.constant dense<0.000000e+00> : vector<2x8x8xf32>
    %87 = tpu.matmul %82, %84, %cst_30 {dimension_numbers = #tpu.dot_dimension_numbers<[2], [2], [1], [1], [0, 0, 0, 1, 1, 1], [0], [0]>} : vector<2x8x32xf32>, vector<2x8x32xf32>, vector<2x8x8xf32> -> vector<2x8x8xf32>
    "tpu.trace_stop"() : () -> ()
    %88 = vector.broadcast %38 : vector<2x1x8xf32> to vector<2x8x8xf32>
    %89 = arith.addf %87, %88 : vector<2x8x8xf32>
    %cst_31 = arith.constant dense<0xFF800000> : vector<2x8xf32>
    %90 = vector.multi_reduction <maximumf>, %89, %cst_31 [2] : vector<2x8x8xf32> to vector<2x8xf32>
    %91 = vector.shape_cast %90 : vector<2x8xf32> to vector<2x8x1xf32>
    %92 = vector.broadcast %91 : vector<2x8x1xf32> to vector<2x8x8xf32>
    %93 = arith.subf %89, %92 : vector<2x8x8xf32>
    %94 = math.exp %93 : vector<2x8x8xf32>
    %cst_32 = arith.constant dense<0.000000e+00> : vector<2x8xf32>
    %95 = vector.multi_reduction <add>, %94, %cst_32 [2] : vector<2x8x8xf32> to vector<2x8xf32>
    %96 = vector.shape_cast %95 : vector<2x8xf32> to vector<2x8x1xf32>
    %97 = tpu.reciprocal %96 {approx = true} : vector<2x8x1xf32> -> vector<2x8x1xf32>
    %98 = vector.broadcast %97 : vector<2x8x1xf32> to vector<2x8x8xf32>
    %99 = arith.mulf %94, %98 : vector<2x8x8xf32>
    "tpu.trace_start"() <{level = 10 : i32, message = "bqk,bkd->bqd"}> : () -> ()
    %cst_33 = arith.constant dense<0.000000e+00> : vector<2x8x32xf32>
    %100 = tpu.matmul %99, %86, %cst_33 {dimension_numbers = #tpu.dot_dimension_numbers<[2], [1], [1], [2], [0, 0, 0, 1, 1, 2], [0], [0]>} : vector<2x8x8xf32>, vector<2x8x32xf32>, vector<2x8x32xf32> -> vector<2x8x32xf32>
    "tpu.trace_stop"() : () -> ()
    %101 = vector.shape_cast %100 : vector<2x8x32xf32> to vector<16x32xf32>
    %102 = vector.extract_strided_slice %37 {offsets = [0, 96], sizes = [16, 32], strides = [1, 1]} : vector<16x384xf32> to vector<16x32xf32>
    %103 = vector.shape_cast %102 : vector<16x32xf32> to vector<2x8x32xf32>
    %104 = vector.extract_strided_slice %37 {offsets = [0, 224], sizes = [16, 32], strides = [1, 1]} : vector<16x384xf32> to vector<16x32xf32>
    %105 = vector.shape_cast %104 : vector<16x32xf32> to vector<2x8x32xf32>
    %106 = vector.extract_strided_slice %37 {offsets = [0, 352], sizes = [16, 32], strides = [1, 1]} : vector<16x384xf32> to vector<16x32xf32>
    %107 = vector.shape_cast %106 : vector<16x32xf32> to vector<2x8x32xf32>
    "tpu.trace_start"() <{level = 10 : i32, message = "bqd,bkd->bqk"}> : () -> ()
    %cst_34 = arith.constant dense<0.000000e+00> : vector<2x8x8xf32>
    %108 = tpu.matmul %103, %105, %cst_34 {dimension_numbers = #tpu.dot_dimension_numbers<[2], [2], [1], [1], [0, 0, 0, 1, 1, 1], [0], [0]>} : vector<2x8x32xf32>, vector<2x8x32xf32>, vector<2x8x8xf32> -> vector<2x8x8xf32>
    "tpu.trace_stop"() : () -> ()
    %109 = vector.broadcast %38 : vector<2x1x8xf32> to vector<2x8x8xf32>
    %110 = arith.addf %108, %109 : vector<2x8x8xf32>
    %cst_35 = arith.constant dense<0xFF800000> : vector<2x8xf32>
    %111 = vector.multi_reduction <maximumf>, %110, %cst_35 [2] : vector<2x8x8xf32> to vector<2x8xf32>
    %112 = vector.shape_cast %111 : vector<2x8xf32> to vector<2x8x1xf32>
    %113 = vector.broadcast %112 : vector<2x8x1xf32> to vector<2x8x8xf32>
    %114 = arith.subf %110, %113 : vector<2x8x8xf32>
    %115 = math.exp %114 : vector<2x8x8xf32>
    %cst_36 = arith.constant dense<0.000000e+00> : vector<2x8xf32>
    %116 = vector.multi_reduction <add>, %115, %cst_36 [2] : vector<2x8x8xf32> to vector<2x8xf32>
    %117 = vector.shape_cast %116 : vector<2x8xf32> to vector<2x8x1xf32>
    %118 = tpu.reciprocal %117 {approx = true} : vector<2x8x1xf32> -> vector<2x8x1xf32>
    %119 = vector.broadcast %118 : vector<2x8x1xf32> to vector<2x8x8xf32>
    %120 = arith.mulf %115, %119 : vector<2x8x8xf32>
    "tpu.trace_start"() <{level = 10 : i32, message = "bqk,bkd->bqd"}> : () -> ()
    %cst_37 = arith.constant dense<0.000000e+00> : vector<2x8x32xf32>
    %121 = tpu.matmul %120, %107, %cst_37 {dimension_numbers = #tpu.dot_dimension_numbers<[2], [1], [1], [2], [0, 0, 0, 1, 1, 2], [0], [0]>} : vector<2x8x8xf32>, vector<2x8x32xf32>, vector<2x8x32xf32> -> vector<2x8x32xf32>
    "tpu.trace_stop"() : () -> ()
    %122 = vector.shape_cast %121 : vector<2x8x32xf32> to vector<16x32xf32>
    %123 = tpu.concatenate %59, %80, %101, %122 in 1 : vector<16x32xf32>, vector<16x32xf32>, vector<16x32xf32>, vector<16x32xf32> -> vector<16x128xf32>
    %124 = arith.truncf %123 : vector<16x128xf32> to vector<16x128xbf16>
    %c0_38 = arith.constant 0 : index
    %c0_39 = arith.constant 0 : index
    %c0_40 = arith.constant 0 : index
    %125 = vector.load %arg8[%c0_38, %c0_39, %c0_40] : memref<1x128x128xbf16, #tpu.memory_space<vmem>>, vector<1x128x128xbf16>
    %126 = vector.shape_cast %125 : vector<1x128x128xbf16> to vector<128x128xbf16>
    %cst_41 = arith.constant dense<0.000000e+00> : vector<16x128xf32>
    %127 = tpu.matmul %124, %126, %cst_41 {dimension_numbers = #tpu.dot_dimension_numbers<[1], [0], [0], [1], [0, 0, 1, 1], [], []>} : vector<16x128xbf16>, vector<128x128xbf16>, vector<16x128xf32> -> vector<16x128xf32>
    %c0_42 = arith.constant 0 : index
    %c0_43 = arith.constant 0 : index
    %c0_44 = arith.constant 0 : index
    %128 = vector.load %arg9[%c0_42, %c0_43, %c0_44] : memref<1x1x128xf32, #tpu.memory_space<vmem>>, vector<1x1x128xf32>
    %129 = vector.shape_cast %128 : vector<1x1x128xf32> to vector<1x128xf32>
    %130 = vector.broadcast %129 : vector<1x128xf32> to vector<16x128xf32>
    %131 = arith.addf %127, %130 : vector<16x128xf32>
    %132 = arith.addf %3, %131 : vector<16x128xf32>
    %cst_45 = arith.constant dense<0.000000e+00> : vector<16xf32>
    %133 = vector.multi_reduction <add>, %132, %cst_45 [1] : vector<16x128xf32> to vector<16xf32>
    %134 = vector.shape_cast %133 : vector<16xf32> to vector<16x1xf32>
    %cst_46 = arith.constant 1.280000e+02 : f32
    %135 = vector.broadcast %cst_46 : f32 to vector<16x1xf32>
    %136 = arith.divf %134, %135 : vector<16x1xf32>
    %137 = vector.broadcast %136 : vector<16x1xf32> to vector<16x128xf32>
    %138 = arith.subf %132, %137 : vector<16x128xf32>
    %139 = arith.mulf %138, %138 : vector<16x128xf32>
    %cst_47 = arith.constant dense<0.000000e+00> : vector<16xf32>
    %140 = vector.multi_reduction <add>, %139, %cst_47 [1] : vector<16x128xf32> to vector<16xf32>
    %141 = vector.shape_cast %140 : vector<16xf32> to vector<16x1xf32>
    %cst_48 = arith.constant 1.280000e+02 : f32
    %142 = vector.broadcast %cst_48 : f32 to vector<16x1xf32>
    %143 = arith.divf %141, %142 : vector<16x1xf32>
    %144 = vector.broadcast %136 : vector<16x1xf32> to vector<16x128xf32>
    %145 = arith.subf %132, %144 : vector<16x128xf32>
    %cst_49 = arith.constant 9.99999974E-6 : f32
    %146 = vector.broadcast %cst_49 : f32 to vector<16x1xf32>
    %147 = arith.addf %143, %146 : vector<16x1xf32>
    %148 = math.rsqrt %147 : vector<16x1xf32>
    %149 = vector.broadcast %148 : vector<16x1xf32> to vector<16x128xf32>
    %150 = arith.mulf %145, %149 : vector<16x128xf32>
    %c0_50 = arith.constant 0 : index
    %c0_51 = arith.constant 0 : index
    %c0_52 = arith.constant 0 : index
    %151 = vector.load %arg10[%c0_50, %c0_51, %c0_52] : memref<1x1x128xf32, #tpu.memory_space<vmem>>, vector<1x1x128xf32>
    %152 = vector.shape_cast %151 : vector<1x1x128xf32> to vector<1x128xf32>
    %153 = vector.broadcast %152 : vector<1x128xf32> to vector<16x128xf32>
    %154 = arith.mulf %150, %153 : vector<16x128xf32>
    %c0_53 = arith.constant 0 : index
    %c0_54 = arith.constant 0 : index
    %c0_55 = arith.constant 0 : index
    %155 = vector.load %arg11[%c0_53, %c0_54, %c0_55] : memref<1x1x128xf32, #tpu.memory_space<vmem>>, vector<1x1x128xf32>
    %156 = vector.shape_cast %155 : vector<1x1x128xf32> to vector<1x128xf32>
    %157 = vector.broadcast %156 : vector<1x128xf32> to vector<16x128xf32>
    %158 = arith.addf %154, %157 : vector<16x128xf32>
    %159 = arith.truncf %158 : vector<16x128xf32> to vector<16x128xbf16>
    %c0_56 = arith.constant 0 : index
    %c0_57 = arith.constant 0 : index
    %c0_58 = arith.constant 0 : index
    %160 = vector.load %arg12[%c0_56, %c0_57, %c0_58] : memref<1x128x256xbf16, #tpu.memory_space<vmem>>, vector<1x128x256xbf16>
    %161 = vector.shape_cast %160 : vector<1x128x256xbf16> to vector<128x256xbf16>
    %cst_59 = arith.constant dense<0.000000e+00> : vector<16x256xf32>
    %162 = tpu.matmul %159, %161, %cst_59 {dimension_numbers = #tpu.dot_dimension_numbers<[1], [0], [0], [1], [0, 0, 1, 1], [], []>} : vector<16x128xbf16>, vector<128x256xbf16>, vector<16x256xf32> -> vector<16x256xf32>
    %c0_60 = arith.constant 0 : index
    %c0_61 = arith.constant 0 : index
    %c0_62 = arith.constant 0 : index
    %163 = vector.load %arg13[%c0_60, %c0_61, %c0_62] : memref<1x1x256xf32, #tpu.memory_space<vmem>>, vector<1x1x256xf32>
    %164 = vector.shape_cast %163 : vector<1x1x256xf32> to vector<1x256xf32>
    %165 = vector.broadcast %164 : vector<1x256xf32> to vector<16x256xf32>
    %166 = arith.addf %162, %165 : vector<16x256xf32>
    %cst_63 = arith.constant 5.000000e-01 : f32
    %167 = vector.broadcast %cst_63 : f32 to vector<16x256xf32>
    %168 = arith.mulf %167, %166 : vector<16x256xf32>
    %cst_64 = arith.constant 0.707106769 : f32
    %169 = vector.broadcast %cst_64 : f32 to vector<16x256xf32>
    %170 = arith.mulf %166, %169 : vector<16x256xf32>
    %171 = math.erf %170 : vector<16x256xf32>
    %cst_65 = arith.constant 1.000000e+00 : f32
    %172 = vector.broadcast %cst_65 : f32 to vector<16x256xf32>
    %173 = arith.addf %172, %171 : vector<16x256xf32>
    %174 = arith.mulf %168, %173 : vector<16x256xf32>
    %175 = arith.truncf %174 : vector<16x256xf32> to vector<16x256xbf16>
    %c0_66 = arith.constant 0 : index
    %c0_67 = arith.constant 0 : index
    %c0_68 = arith.constant 0 : index
    %176 = vector.load %arg14[%c0_66, %c0_67, %c0_68] : memref<1x256x128xbf16, #tpu.memory_space<vmem>>, vector<1x256x128xbf16>
    %177 = vector.shape_cast %176 : vector<1x256x128xbf16> to vector<256x128xbf16>
    %cst_69 = arith.constant dense<0.000000e+00> : vector<16x128xf32>
    %178 = tpu.matmul %175, %177, %cst_69 {dimension_numbers = #tpu.dot_dimension_numbers<[1], [0], [0], [1], [0, 0, 1, 1], [], []>} : vector<16x256xbf16>, vector<256x128xbf16>, vector<16x128xf32> -> vector<16x128xf32>
    %c0_70 = arith.constant 0 : index
    %c0_71 = arith.constant 0 : index
    %c0_72 = arith.constant 0 : index
    %179 = vector.load %arg15[%c0_70, %c0_71, %c0_72] : memref<1x1x128xf32, #tpu.memory_space<vmem>>, vector<1x1x128xf32>
    %180 = vector.shape_cast %179 : vector<1x1x128xf32> to vector<1x128xf32>
    %181 = vector.broadcast %180 : vector<1x128xf32> to vector<16x128xf32>
    %182 = arith.addf %178, %181 : vector<16x128xf32>
    %183 = arith.addf %132, %182 : vector<16x128xf32>
    %c0_73 = arith.constant 0 : index
    %c0_74 = arith.constant 0 : index
    %184 = vector.load %arg17[%c0_73, %c0_74] : memref<16x128xf32, #tpu.memory_space<vmem>>, vector<16x128xf32>
    tpu.vector_store %arg17[%c0_73, %c0_74], %183 {strides = array<i32>} : memref<16x128xf32, #tpu.memory_space<vmem>>, vector<16x128xf32>,
    %c1_i32 = arith.constant 1 : i32
    %185 = arith.cmpi eq, %arg1, %c1_i32 : i32
    %186 = arith.extui %185 : i1 to i32
    %c0_i32_75 = arith.constant 0 : i32
    %187 = arith.cmpi ne, %186, %c0_i32_75 : i32
    scf.if %187 {
      %188 = vector.shape_cast %183 : vector<16x128xf32> to vector<2x8x128xf32>
      %c0_76 = arith.constant 0 : index
      %c0_77 = arith.constant 0 : index
      %c0_78 = arith.constant 0 : index
      %189 = vector.load %arg16[%c0_76, %c0_77, %c0_78] : memref<2x8x128xf32, #tpu.memory_space<vmem>>, vector<2x8x128xf32>
      tpu.vector_store %arg16[%c0_76, %c0_77, %c0_78], %188 {strides = array<i32>} : memref<2x8x128xf32, #tpu.memory_space<vmem>>, vector<2x8x128xf32>,
    } else {
    }
    return
  }
  func.func @transform_0(%arg0: i32, %arg1: i32) -> (i32, i32, i32) {
    %c0_i32 = arith.constant 0 : i32
    %c0_i32_0 = arith.constant 0 : i32
    %c0_i32_1 = arith.constant 0 : i32
    return %arg0, %c0_i32, %c0_i32_0 : i32, i32, i32
  }
  func.func @transform_1(%arg0: i32, %arg1: i32) -> (i32, i32, i32) {
    %c0_i32 = arith.constant 0 : i32
    %c0_i32_0 = arith.constant 0 : i32
    %c0_i32_1 = arith.constant 0 : i32
    return %arg0, %c0_i32, %c0_i32_0 : i32, i32, i32
  }
  func.func @transform_2(%arg0: i32, %arg1: i32) -> (i32, i32, i32) {
    %c0_i32 = arith.constant 0 : i32
    %c0_i32_0 = arith.constant 0 : i32
    %c0_i32_1 = arith.constant 0 : i32
    return %arg1, %c0_i32, %c0_i32_0 : i32, i32, i32
  }
  func.func @transform_3(%arg0: i32, %arg1: i32) -> (i32, i32, i32) {
    %c0_i32 = arith.constant 0 : i32
    %c0_i32_0 = arith.constant 0 : i32
    %c0_i32_1 = arith.constant 0 : i32
    return %arg1, %c0_i32, %c0_i32_0 : i32, i32, i32
  }
  func.func @transform_4(%arg0: i32, %arg1: i32) -> (i32, i32, i32) {
    %c0_i32 = arith.constant 0 : i32
    %c0_i32_0 = arith.constant 0 : i32
    %c0_i32_1 = arith.constant 0 : i32
    return %arg1, %c0_i32, %c0_i32_0 : i32, i32, i32
  }
  func.func @transform_5(%arg0: i32, %arg1: i32) -> (i32, i32, i32) {
    %c0_i32 = arith.constant 0 : i32
    %c0_i32_0 = arith.constant 0 : i32
    %c0_i32_1 = arith.constant 0 : i32
    return %arg1, %c0_i32, %c0_i32_0 : i32, i32, i32
  }
  func.func @transform_6(%arg0: i32, %arg1: i32) -> (i32, i32, i32) {
    %c0_i32 = arith.constant 0 : i32
    %c0_i32_0 = arith.constant 0 : i32
    %c0_i32_1 = arith.constant 0 : i32
    return %arg1, %c0_i32, %c0_i32_0 : i32, i32, i32
  }
  func.func @transform_7(%arg0: i32, %arg1: i32) -> (i32, i32, i32) {
    %c0_i32 = arith.constant 0 : i32
    %c0_i32_0 = arith.constant 0 : i32
    %c0_i32_1 = arith.constant 0 : i32
    return %arg1, %c0_i32, %c0_i32_0 : i32, i32, i32
  }
  func.func @transform_8(%arg0: i32, %arg1: i32) -> (i32, i32, i32) {
    %c0_i32 = arith.constant 0 : i32
    %c0_i32_0 = arith.constant 0 : i32
    %c0_i32_1 = arith.constant 0 : i32
    return %arg1, %c0_i32, %c0_i32_0 : i32, i32, i32
  }
  func.func @transform_9(%arg0: i32, %arg1: i32) -> (i32, i32, i32) {
    %c0_i32 = arith.constant 0 : i32
    %c0_i32_0 = arith.constant 0 : i32
    %c0_i32_1 = arith.constant 0 : i32
    return %arg1, %c0_i32, %c0_i32_0 : i32, i32, i32
  }
  func.func @transform_10(%arg0: i32, %arg1: i32) -> (i32, i32, i32) {
    %c0_i32 = arith.constant 0 : i32
    %c0_i32_0 = arith.constant 0 : i32
    %c0_i32_1 = arith.constant 0 : i32
    return %arg1, %c0_i32, %c0_i32_0 : i32, i32, i32
  }
  func.func @transform_11(%arg0: i32, %arg1: i32) -> (i32, i32, i32) {
    %c0_i32 = arith.constant 0 : i32
    %c0_i32_0 = arith.constant 0 : i32
    %c0_i32_1 = arith.constant 0 : i32
    return %arg1, %c0_i32, %c0_i32_0 : i32, i32, i32
  }
  func.func @transform_12(%arg0: i32, %arg1: i32) -> (i32, i32, i32) {
    %c0_i32 = arith.constant 0 : i32
    %c0_i32_0 = arith.constant 0 : i32
    %c0_i32_1 = arith.constant 0 : i32
    return %arg1, %c0_i32, %c0_i32_0 : i32, i32, i32
  }
  func.func @transform_13(%arg0: i32, %arg1: i32) -> (i32, i32, i32) {
    %c0_i32 = arith.constant 0 : i32
    %c0_i32_0 = arith.constant 0 : i32
    %c0_i32_1 = arith.constant 0 : i32
    return %arg1, %c0_i32, %c0_i32_0 : i32, i32, i32
  }
  func.func @transform_14(%arg0: i32, %arg1: i32) -> (i32, i32, i32) {
    %c0_i32 = arith.constant 0 : i32
    %c0_i32_0 = arith.constant 0 : i32
    %c0_i32_1 = arith.constant 0 : i32
    return %arg0, %c0_i32, %c0_i32_0 : i32, i32, i32
  }
}

</mosaic_0001>

<bundles_post_ra>
// kernel: tpu_custom_call.1
= control target key start
LH: loop header
LB: loop body
LE: loop exit
PB: predicated region body
PF: predicated region fallthrough
CT: control target
= control target key end

     0   :  { %s4296_s0 = inlined_call_operand.hbm [shape: f32[2,8,128], index: 0, kind: input, shape index: {}]   ;;  %s4297_s1 = inlined_call_operand.hbm [shape: f32[2,1,8], index: 1, kind: input, shape index: {}]   ;;  %s4298_s2 = inlined_call_operand.hbm [shape: f32[2,1,128], index: 2, kind: input, shape index: {}]   ;;  %s4299_s3 = inlined_call_operand.vmem [shape: f32[2,1,128], index: 3, kind: input, shape index: {}]   ;;  %s4300_s4 = inlined_call_operand.hbm [shape: bf16[2,128,384], index: 4, kind: input, shape index: {}]   ;;  %s4301_s5 = inlined_call_operand.hbm [shape: f32[2,1,384], index: 5, kind: input, shape index: {}]   ;;  %s4302_s6 = inlined_call_operand.hbm [shape: bf16[2,128,128], index: 6, kind: input, shape index: {}]   ;;  %s4303_s7 = inlined_call_operand.hbm [shape: f32[2,1,128], index: 7, kind: input, shape index: {}]   ;;  %s4304_s8 = inlined_call_operand.hbm [shape: f32[2,1,128], index: 8, kind: input, shape index: {}]   ;;  %s4305_s9 = inlined_call_operand.vmem [shape: f32[2,1,128], index: 9, kind: input, shape index: {}]   ;;  %s4306_s10 = inlined_call_operand.hbm [shape: bf16[2,128,256], index: 10, kind: input, shape index: {}]   ;;  %s4307_s11 = inlined_call_operand.vmem [shape: f32[2,1,256], index: 11, kind: input, shape index: {}]   ;;  %s4308_s12 = inlined_call_operand.hbm [shape: bf16[2,256,128], index: 12, kind: input, shape index: {}]   ;;  %s4309_s13 = inlined_call_operand.vmem [shape: f32[2,1,128], index: 13, kind: input, shape index: {}]   ;;  %s4310_s14 = inlined_call_operand.hbm [shape: f32[2,8,128], index: 14, kind: output, shape index: {}]  }
   0x1   :  { %4319 = sst [smem:[#allocation26_spill]] %s4296_s0 }
   0x2   :  { %4320 = sst [smem:[#allocation27_spill]] %s4297_s1 }
   0x3   :  { %4321 = sst [smem:[#allocation28_spill]] %s4298_s2 }
   0x4   :  { %4322 = sst [smem:[#allocation29_spill]] %s4299_s3 }
   0x5   :  { %4323 = sst [smem:[#allocation30_spill]] %s4300_s4 }
   0x6   :  { %4324 = sst [smem:[#allocation31_spill]] %s4301_s5 }
   0x7   :  { %4325 = sst [smem:[#allocation32_spill]] %s4302_s6 }
   0x8   :  { %4326 = sst [smem:[#allocation33_spill]] %s4303_s7 }
   0x9   :  { %4327 = sst [smem:[#allocation34_spill]] %s4305_s9 }
   0xa   :  { %4328 = sst [smem:[#allocation35_spill]] %s4307_s11 }
   0xb   :  { %4329 = sst [smem:[#allocation36_spill]] %s4309_s13 }
   0xc   :  { %4330 = sst [smem:[#allocation37_spill]] %s4310_s14 }
   0xd   :  { %19 = vsyncpa [#allocation4], 0 }
   0xe   :  { %20 = vsyncpa [#allocation7], 0 }
   0xf   :  { %21 = vsyncpa [#allocation5], 0  ;;  %s3644_s29 = smov 0   ;;  %s3646_s30 = smov 0  }
  0x10   :  { %s3648_s15 = smov 0   ;;  %s3650_s16 = smov 0  }
  0x11   :  { %s3652_s17 = smov 0   ;;  %s3654_s18 = smov 0  }
  0x12 LB: > { %4331 = sst [smem:[#allocation21_spill]] %s3538_s15  ;;  %s3673_s19 = sadd.s32 4294967295, %s3550_s18   ;;  %s3550_s18 = sphi %s3654_s18, %s27_s18   ;;  %s3546_s17 = sphi %s3652_s17, %s4374_s17   ;;  %s3542_s16 = sphi %s3650_s16, %s4373_s16   ;;  %s3538_s15 = sphi %s3648_s15, %s4369_s15   ;;  %s3534_s30 = sphi %s3646_s30, %s4372_s30   ;;  %s3530_s29 = sphi %s3644_s29, %s4371_s29  }
  0x13   : > { %4332 = sst [smem:[#allocation22_spill]] %s3542_s16  ;;  %p105_p0 = scmp.ne.s32.totalorder %s3538_s15, %s3534_s30 }
  0x14   : > { %4333 = sst [smem:[#allocation23_spill]] %s3550_s18  ;;  %p106_p1 = scmp.eq.s32.totalorder %s3550_s18, 0 }
  0x15   : > { %p111_p2 = scmp.ne.s32.totalorder %s3534_s30, %s3530_s29  ;;  %p112_p3 = scmp.eq.s32.totalorder %s3673_s19, 0 }
  0x16   : > { %p3681_p4 = por %p106_p1, %p105_p0  ;;  %p2566_p5 = scmp.ge.s32.totalorder %s3550_s18, 1 }
  0x17   : > { %p3688_p6 = por %p112_p3, %p111_p2  ;;  %p434_p7 = scmp.lt.s32.totalorder %s3550_s18, 3 }
  0x18   : > { %s4336_s0 = sld [smem:[#allocation26_spill]]  ;;  %s3552_s27 = smov [#allocation3]  }
  0x19   : > { %p3696_p8 = pnand %p2566_p5, %p434_p7  ;;  %s450_s28 = sshll.u32 %s3552_s27, 4  ;;  %s451_s28 = int_to_ptr.vmem [resolvable:$true] %s450_s28 }
  0x1a   : > { %p3012_p11 = scmp.lt.s32.totalorder %s3550_s18, 2  ;;  %s4311_s23 = smov 128  }
  0x1b   : > { %p2978_p9 = pneg %p3696_p8  ;;  %s4312_s24 = smov 8  }
  0x1c   : > { %p3716_p12 = pnand %p3012_p11, %p3681_p4  ;;  %s36_s20 = sadd.s32 1, %s3546_s17 }
  0x1d   : > { %p3704_p10 = pnand %p2978_p9, %p112_p3  ;;  %p37_p13 = scmp.ge.s32.totalorder %s36_s20, 2 }
  0x1e   : > { %s448_s25 = sshll.u32 %s4336_s0, 4  ;;  %s480_s0 = sand.u32 1, %s3550_s18   ;;  %s449_s25 = int_to_ptr.hbm [resolvable:$true] %s448_s25 }
  0x1f   : > { %2981 = dma.hbm_to_vmem [thread:$0]  (!%p3704_p10), %s449_s25, 256, %s451_s28, [#allocation4], %s4311_s23, %s4311_s23, %s4312_s24  }
  0x20   : > { %s4376_s20 = smov (%p37_p13, %s36_s20), 0  ;;  %s3725_s14 = sand.u32 1, %s3538_s15  }
  0x21   : > { %4340 = sst [smem:[#allocation24_spill]] %s4376_s20  ;;  %s95_s25 = ssub.s32 %s3546_s17, %s4376_s20 }
  0x22   : > { %s4341_s2 = sld [smem:[#allocation28_spill]]  ;;  %p96_p0 = scmp.eq.s32.totalorder %s95_s25, 0 }
  0x23   : > { %s483_s23 = scalar_lea.vmem [#allocation8], %s3725_s14  ;;  %s4342_s9 = sadd.s32 1, %s3538_s15 }
  0x24   : > { %s490_s24 = sshll.u32 %s483_s23, 4  ;;  %s2944_s3 = smul.u32 192, %s3725_s14  ;;  %s491_s24 = int_to_ptr.vmem [resolvable:$true] %s490_s24 }
  0x25   : > { %s3737_s18 = scalar_select %p96_p0, %s3538_s15, %s4342_s9  }
  0x26   : > { %s3740_s16 = scalar_lea.sflag [#allocation4], %s480_s0  ;;  %s2945_s11 = smul.u32 192, %s3546_s17 }
  0x27   : > { %4343 = sst [smem:[#allocation25_spill]] %s3737_s18  ;;  %s507_s13 = scalar_lea.vmem [#allocation9], %s2944_s3 }
  0x28   : > { %s486_s21 = scalar_lea.hbm %s4341_s2, %s3546_s17  ;;  %s4344_s4 = sld [smem:[#allocation30_spill]] }
  0x29   : > { %s488_s28 = sshll.u32 %s486_s21, 4  ;;  %s515_s21 = sshll.u32 %s507_s13, 4  ;;  %s489_s28 = int_to_ptr.hbm [resolvable:$true] %s488_s28  ;;  %s516_s21 = int_to_ptr.vmem [resolvable:$true] %s515_s21 }
  0x2a   : > { %2988 = dma.hbm_to_vmem [thread:$0]  (!%p3716_p12), %s489_s28, 16, %s491_s24, %s3740_s16  }
  0x2b   : > { %s2946_s0 = smul.u32 3, %s3725_s14  ;;  %s3555_s20 = smov 192  }
  0x2c   : > { %s3556_s18 = smov 12   ;;  %s2947_s15 = smul.u32 3, %s3546_s17 }
  0x2d   : > { %s529_s24 = scalar_lea.vmem [#allocation10], %s2946_s0  ;;  %s2571_s3 = sshll.u32 %s3725_s14, 6 }
  0x2e   : > { %s512_s23 = scalar_lea.hbm %s4344_s4, %s2945_s11  ;;  %s537_s28 = sshll.u32 %s529_s24, 4  ;;  %s538_s28 = int_to_ptr.vmem [resolvable:$true] %s537_s28 }
  0x2f   : > { %s513_s9 = sshll.u32 %s512_s23, 4  ;;  %s4345_s5 = sld [smem:[#allocation31_spill]]  ;;  %s514_s9 = int_to_ptr.hbm [resolvable:$true] %s513_s9 }
  0x30   : > { %2991 = dma.hbm_to_vmem [thread:$0]  (!%p3716_p12), %s514_s9, 3072, %s516_s21, %s3740_s16, %s3555_s20, %s3555_s20, %s3556_s18  }
  0x31   : > { %s2877_s23 = sshll.u32 %s3546_s17, 6  ;;  %s4346_s6 = sld [smem:[#allocation32_spill]] }
  0x32   : > { %s548_s21 = scalar_lea.vmem [#allocation11], %s2571_s3  ;;  %s4318_s24 = smov 4  }
  0x33   : > { %s556_s9 = sshll.u32 %s548_s21, 4  ;;  %s4347_s7 = sld [smem:[#allocation33_spill]]  ;;  %s557_s9 = int_to_ptr.vmem [resolvable:$true] %s556_s9 }
  0x34   : > { %s569_s13 = scalar_lea.vmem [#allocation12], %s3725_s14  ;;  %s589_s18 = scalar_lea.hbm %s4304_s8, %s3546_s17 }
  0x35   : > { %s533_s11 = scalar_lea.hbm %s4345_s5, %s2947_s15  ;;  %s4317_s15 = smov 64  }
  0x36   : > { %s535_s25 = sshll.u32 %s533_s11, 4  ;;  %s576_s2 = sshll.u32 %s569_s13, 4  ;;  %s536_s25 = int_to_ptr.hbm [resolvable:$true] %s535_s25  ;;  %s577_s2 = int_to_ptr.vmem [resolvable:$true] %s576_s2 }
  0x37   : > { %2994 = dma.hbm_to_vmem [thread:$0]  (!%p3716_p12), %s536_s25, 48, %s538_s28, %s3740_s16  }
  0x38   : > { %s553_s20 = scalar_lea.hbm %s4346_s6, %s2877_s23  ;;  %s2878_s4 = sshll.u32 %s3546_s17, 7 }
  0x39   : > { %s554_s0 = sshll.u32 %s553_s20, 4  ;;  %s572_s3 = scalar_lea.hbm %s4347_s7, %s3546_s17  ;;  %s555_s0 = int_to_ptr.hbm [resolvable:$true] %s554_s0 }
  0x3a   : > { %2997 = dma.hbm_to_vmem [thread:$0]  (!%p3716_p12), %s555_s0, 1024, %s557_s9, %s3740_s16, %s4317_s15, %s4317_s15, %s4318_s24  }
  0x3b   : > { %s574_s11 = sshll.u32 %s572_s3, 4  ;;  %s586_s20 = scalar_lea.vmem [#allocation13], %s3725_s14  ;;  %s575_s11 = int_to_ptr.hbm [resolvable:$true] %s574_s11 }
  0x3c   : > { %3000 = dma.hbm_to_vmem [thread:$0]  (!%p3716_p12), %s575_s11, 16, %s577_s2, %s3740_s16  }
  0x3d   : > { %s593_s21 = sshll.u32 %s586_s20, 4  ;;  %s591_s9 = sshll.u32 %s589_s18, 4  ;;  %s594_s21 = int_to_ptr.vmem [resolvable:$true] %s593_s21  ;;  %s592_s9 = int_to_ptr.hbm [resolvable:$true] %s591_s9 }
  0x3e   : > { %s2574_s0 = sshll.u32 %s3725_s14, 7  ;;  %s615_s13 = scalar_lea.hbm %s4306_s10, %s2878_s4 }
  0x3f   : > { %3003 = dma.hbm_to_vmem [thread:$0]  (!%p3716_p12), %s592_s9, 16, %s594_s21, %s3740_s16  }
  0x40   : > { %s610_s2 = scalar_lea.vmem [#allocation14], %s2574_s0  ;;  %s616_s25 = sshll.u32 %s615_s13, 4  ;;  %s617_s25 = int_to_ptr.hbm [resolvable:$true] %s616_s25 }
  0x41   : > { %s618_s11 = sshll.u32 %s610_s2, 4  ;;  %s4348_s1 = sld [smem:[#allocation27_spill]]  ;;  %s619_s11 = int_to_ptr.vmem [resolvable:$true] %s618_s11 }
  0x42   : > { %s4349_s14 = smov 8   ;;  %s4350_s20 = smov 128  }
  0x43   : > { %3006 = dma.hbm_to_vmem [thread:$0]  (!%p3716_p12), %s617_s25, 2048, %s619_s11, %s3740_s16, %s4350_s20, %s4350_s20, %s4349_s14  }
  0x44   : > { %s3559_s21 = smov [#allocation6]   ;;  %s3560_s28 = smov 16  }
  0x45   : > { %s466_s9 = sshll.u32 %s3559_s21, 4  ;;  %s3561_s3 = smov 1   ;;  %s467_s9 = int_to_ptr.vmem [resolvable:$true] %s466_s9 }
  0x46   : > { %s644_s15 = scalar_lea.hbm %s4308_s12, %s2878_s4  ;;  %s639_s24 = scalar_lea.vmem [#allocation15], %s2574_s0 }
  0x47   : > { %s464_s18 = sshll.u32 %s4348_s1, 4  ;;  %s645_s23 = sshll.u32 %s644_s15, 4  ;;  %s465_s18 = int_to_ptr.hbm [resolvable:$true] %s464_s18  ;;  %s646_s23 = int_to_ptr.hbm [resolvable:$true] %s645_s23 }
  0x48   : > { %2984 = dma.hbm_to_vmem [thread:$0]  (!%p3704_p10), %s465_s18, 32, %s467_s9, [#allocation7], %s3560_s28, %s3560_s28, %s3561_s3  }
  0x49   : > { %s647_s1 = sshll.u32 %s639_s24, 4  ;;  %s4351_s5 = smov 4   ;;  %s648_s1 = int_to_ptr.vmem [resolvable:$true] %s647_s1 }
  0x4a   : > { %s4352_s11 = smov 64   ;;  %665 = sbr.rel (%p3696_p8) target bundleno = 2760 (0xac8), region = 76 }
  0x4b   : > { %3009 = dma.hbm_to_vmem [thread:$0]  (!%p3716_p12), %s646_s23, 2048, %s648_s1, %s3740_s16, %s4352_s11, %s4352_s11, %s4351_s5  }
  0x4f   : > { %3513 = dma.done.wait (%p112_p3), [#allocation4], 256  }
  0x50   : > { %3515 = vsyncadd (%p112_p3), [#allocation4], 4294967040 }
  0x51   : > { %3517 = dma.done.wait (%p112_p3), [#allocation7], 32  }
  0x52   : > { %3519 = vsyncadd (%p112_p3), [#allocation7], 4294967264  ;;  %s677_s29 = sand.u32 1, %s3673_s19   ;;  %s3824_s1 = sand.u32 1, %s3534_s30  }
  0x53   : > { %s678_s5 = scalar_lea.sflag [#allocation4], %s677_s29 }
  0x54   : > { %3521 = dma.done.wait (%p3688_p6), %s678_s5, 8288  }
  0x55   : > { %3523 = vsyncadd (%p3688_p6), %s678_s5, 4294959008  ;;  %s4353_s26 = sld [smem:[#allocation22_spill]]  ;;  %s2948_s27 = smul.u32 192, %s3824_s1 }
  0x56   : > { %s2583_s24 = sshll.u32 %s3824_s1, 6  ;;  %s2949_s0 = smul.u32 3, %s3824_s1 }
  0x57   : > { %s2584_s4 = sshll.u32 %s3824_s1, 7  ;;  %s4355_s28 = sld [smem:[#allocation34_spill]] }
  0x58   : > { %s4356_s23 = sld [smem:[#allocation36_spill]]  ;;  %s3857_s7 = scalar_lea.vmem [#allocation9], %s2948_s27 }
  0x59   : > { %s4357_s16 = sld [smem:[#allocation35_spill]]  ;;  %s3859_s18 = scalar_lea.vmem [#allocation10], %s2949_s0 }
  0x5a   : > { %s3861_s14 = scalar_lea.vmem [#allocation11], %s2583_s24  ;;  %s719_s22 = scalar_lea.vmem [#allocation12], %s3824_s1 }
  0x5b   : > { %p836_p1 = scmp.lt.s32.totalorder %s4353_s26, 1  ;;  %s728_s20 = scalar_lea.vmem [#allocation13], %s3824_s1 }
  0x5c   : > { %s3865_s21 = scalar_lea.vmem [#allocation14], %s2584_s4  ;;  %s3867_s9 = scalar_lea.vmem [#allocation15], %s2584_s4 }
  0x5d   : > { %s3837_s25 = scalar_select %p836_p1, %s4353_s26, 1 }
  0x5e   : > { %p2587_p2 = scmp.ne.s32.totalorder %s4353_s26, 0 }
  0x5f   : > { %s841_s3 = scalar_lea.vmem %s4355_s28, %s3837_s25  ;;  %s2586_s13 = sshll.u32 %s3837_s25, 1 }
  0x60   : > { %s848_s11 = scalar_lea.vmem %s4356_s23, %s3837_s25  ;;  %s3855_s6 = scalar_lea.vmem %s4357_s16, %s2586_s13 }
  0x61   : > { %853 = sbr.rel (%p2587_p2) target bundleno = 105 (0x69), region = 120 }
  0x66   : > { %v854_v0 = vld [vmem:[#allocation3] sm:$0xff]  ;;  %v855_v1 = vld [vmem:[#allocation3 + $0x8] sm:$0xff] }
  0x67   : > { %856 = vst [vmem:[#allocation2] sm:$0xff] %v854_v0 }
  0x68   : > { %857 = vst [vmem:[#allocation2 + $0x8] sm:$0xff] %v855_v1 }
  0x69 PF: > { %v3562_v4 = vmov 128.0   ;;  %v2674_v19 = vld [vmem:[%s3857_s7 + $0xa8] sm:$0xf]  ;;  %v2902_v20 = vld [vmem:[%s3857_s7 + $0xb0] sm:$0xf0]  ;;  %s4359_s27 = sld [smem:[#allocation29_spill]] }
  0x6a   : > { %3110 = vrcp.f32 %v3562_v4  ;;  %v2901_v21 = vld [vmem:[%s3857_s7 + $0xac] sm:$0xf]  ;;  %v2675_v22 = vor.u32 %v2902_v20, %v2674_v19  ;;  %v2676_v23 = vld [vmem:[%s3857_s7 + $0xb4] sm:$0xf0]  ;;  %v2682_v24 = vld [vmem:[%s3857_s7 + $0xb0] sm:$0xf] }
  0x6b   : > { %v2903_v25 = vld [vmem:[%s3857_s7 + $0xb8] sm:$0xf0]  ;;  %v2679_v26 = vor.u32 %v2901_v21, %v2676_v23  ;;  %v2662_v28 = vld [vmem:[%s3857_s7 + $0x90] sm:$0xf]  ;;  %v2898_v30 = vld [vmem:[%s3857_s7 + $0x94] sm:$0xf] }
  0x6c   : > { %v2683_v27 = vor.u32 %v2903_v25, %v2682_v24  ;;  %1088 = vmatpush.bf16.msra.mxu0 %v2675_v22  ;;  %v2899_v29 = vld [vmem:[%s3857_s7 + $0x98] sm:$0xf0]  ;;  %v2664_v32 = vld [vmem:[%s3857_s7 + $0x9c] sm:$0xf0]  ;;  %v2670_v33 = vld [vmem:[%s3857_s7 + $0x98] sm:$0xf] }
  0x6d   : > { %1102 = vmatpush.bf16.msra.mxu1 %v2679_v26  ;;  %v2663_v31 = vor.u32 %v2899_v29, %v2662_v28  ;;  %v2900_v34 = vld [vmem:[%s3857_s7 + $0xa0] sm:$0xf0]  ;;  %v2667_v35 = vor.u32 %v2898_v30, %v2664_v32  ;;  %v2650_v37 = vld [vmem:[%s3857_s7 + $0x78] sm:$0xf]  ;;  %v2895_v39 = vld [vmem:[%s3857_s7 + $0x7c] sm:$0xf] }
  0x6e   : > { %v3870_v2 = vld [vmem:[#allocation2] sm:$0xff]  ;;  %1116 = vmatpush.bf16.msra.mxu2 %v2683_v27  ;;  %v2671_v36 = vor.u32 %v2900_v34, %v2670_v33  ;;  %v2896_v38 = vld [vmem:[%s3857_s7 + $0x80] sm:$0xf0]  ;;  %v2652_v41 = vld [vmem:[%s3857_s7 + $0x84] sm:$0xf0]  ;;  %vm1138_vm7 = vcmask 261120  }
  0x6f   : > { %860 = vadd.xlane.f32.xlu0 %v3870_v2  ;;  %v3873_v3 = vld [vmem:[#allocation2 + $0x8] sm:$0xff]  ;;  %v2651_v40 = vor.u32 %v2896_v38, %v2650_v37  ;;  %v2658_v42 = vld [vmem:[%s3857_s7 + $0x80] sm:$0xf]  ;;  %v2897_v43 = vld [vmem:[%s3857_s7 + $0x88] sm:$0xf0]  ;;  %v2655_v44 = vor.u32 %v2895_v39, %v2652_v41  ;;  %s4360_s24 = scalar_lea.vmem %s4359_s27, %s3837_s25  ;;  %s3563_s0 = smov 96  }
  0x70   : > { %v3111_v5 = vpop.eup %3110  ;;  %1089 = vmatpush.bf16.msra.mxu0 %v2663_v31  ;;  %v2659_v45 = vor.u32 %v2897_v43, %v2658_v42  ;;  %v2638_v46 = vld [vmem:[%s3857_s7 + $0x60] sm:$0xf]  ;;  %v2893_v47 = vld [vmem:[%s3857_s7 + $0x68] sm:$0xf0]  ;;  %v2892_v48 = vld [vmem:[%s3857_s7 + $0x64] sm:$0xf] }
  0x71   : > { %v865_v6 = vmul.f32 128.0, %v3111_v5  ;;  %vm869_vm0 = vweird.f32 %v3111_v5  ;;  %1103 = vmatpush.bf16.msra.mxu1 %v2667_v35  ;;  %v2639_v49 = vor.u32 %v2893_v47, %v2638_v46  ;;  %v2640_v50 = vld [vmem:[%s3857_s7 + $0x6c] sm:$0xf0]  ;;  %v2646_v51 = vld [vmem:[%s3857_s7 + $0x68] sm:$0xf]  ;;  %vm1191_vm8 = vcmask 64512  }
  0x72   : > { %1117 = vmatpush.bf16.msra.mxu2 %v2671_v36  ;;  %v2894_v52 = vld [vmem:[%s3857_s7 + $0x70] sm:$0xf0]  ;;  %v2643_v53 = vor.u32 %v2892_v48, %v2640_v50  ;;  %v2626_v55 = vld [vmem:[%s3857_s7 + $0x48] sm:$0xf]  ;;  %v2889_v57 = vld [vmem:[%s3857_s7 + $0x4c] sm:$0xf] }
  0x73   : > { %v866_v7 = vsub.f32 1.0, %v865_v6  ;;  %v2647_v54 = vor.u32 %v2894_v52, %v2646_v51  ;;  %v2890_v56 = vld [vmem:[%s3857_s7 + $0x50] sm:$0xf0]  ;;  %v2628_v59 = vld [vmem:[%s3857_s7 + $0x54] sm:$0xf0]  ;;  %s3564_s4 = smov 64  }
  0x74   : > { %1090 = vmatpush.bf16.msra.mxu0 %v2651_v40  ;;  %v2627_v58 = vor.u32 %v2890_v56, %v2626_v55  ;;  %v2634_v60 = vld [vmem:[%s3857_s7 + $0x50] sm:$0xf]  ;;  %v2891_v61 = vld [vmem:[%s3857_s7 + $0x58] sm:$0xf0]  ;;  %v2631_v62 = vor.u32 %v2889_v57, %v2628_v59  ;;  %v2886_v4 = vld [vmem:[%s3857_s7 + $0x34] sm:$0xf] }
  0x75   : > { %v867_v8 = vmul.f32 %v3111_v5, %v866_v7  ;;  %1104 = vmatpush.bf16.msra.mxu1 %v2655_v44  ;;  %v2635_v63 = vor.u32 %v2891_v61, %v2634_v60  ;;  %v2614_v0 = vld [vmem:[%s3857_s7 + $0x30] sm:$0xf]  ;;  %v2887_v1 = vld [vmem:[%s3857_s7 + $0x38] sm:$0xf0]  ;;  %v2616_v6 = vld [vmem:[%s3857_s7 + $0x3c] sm:$0xf0] }
  0x76   : > { %1118 = vmatpush.bf16.msra.mxu2 %v2659_v45  ;;  %v2622_v7 = vld [vmem:[%s3857_s7 + $0x38] sm:$0xf]  ;;  %v2610_v19 = vld [vmem:[%s3857_s7 + $0x20] sm:$0xf]  ;;  %v2885_v20 = vld [vmem:[%s3857_s7 + $0x28] sm:$0xf0] }
  0x77   : > { %862 = vadd.xlane.f32.xlu0 %v3873_v3  ;;  %v868_v9 = vadd.f32 %v3111_v5, %v867_v8  ;;  %v2888_v8 = vld [vmem:[%s3857_s7 + $0x40] sm:$0xf0]  ;;  %v2611_v22 = vor.u32 %v2885_v20, %v2610_v19  ;;  %v2590_v23 = vld [vmem:[%s3857_s7] sm:$0xf]  ;;  %v2881_v24 = vld [vmem:[%s3857_s7 + $0x8] sm:$0xf0] }
  0x78   : > { %1091 = vmatpush.bf16.msra.mxu0 %v2639_v49  ;;  %v2880_v25 = vld [vmem:[%s3857_s7 + $0x4] sm:$0xf]  ;;  %v2591_v27 = vor.u32 %v2881_v24, %v2590_v23  ;;  %v2592_v28 = vld [vmem:[%s3857_s7 + $0xc] sm:$0xf0]  ;;  %v2598_v29 = vld [vmem:[%s3857_s7 + $0x8] sm:$0xf] }
  0x79   : > { %v3876_v10 = vsel %vm869_vm0, %v3111_v5, %v868_v9  ;;  %1105 = vmatpush.bf16.msra.mxu1 %v2643_v53  ;;  %v2615_v5 = vor.u32 %v2887_v1, %v2614_v0  ;;  %v2619_v9 = vor.u32 %v2886_v4, %v2616_v6  ;;  %v2882_v30 = vld [vmem:[%s3857_s7 + $0x10] sm:$0xf0]  ;;  %v2595_v32 = vor.u32 %v2880_v25, %v2592_v28  ;;  %v3103_v56 = vld [vmem:[%s4360_s24] ss:$0 sm:$0xff]  ;;  %v3975_v20 = vld [vmem:[#allocation6 + $0x1] ss:$0 sm:$0xff] }
  0x7a   : > { %1119 = vmatpush.bf16.msra.mxu2 %v2647_v54  ;;  %v2599_v33 = vor.u32 %v2882_v30, %v2598_v29  ;;  %s3565_s28 = smov 32   ;;  %vm1678_vm9 = vcmask 523264   ;;  %vm1681_vm10 = vcmask 785408  }
  0x7c   : > { %1092 = vmatpush.bf16.msra.mxu0 %v2627_v58 }
  0x7d   : > { %1106 = vmatpush.bf16.msra.mxu1 %v2631_v62 }
  0x7e   : > { %1120 = vmatpush.bf16.msra.mxu2 %v2635_v63 }
  0x80   : > { %1093 = vmatpush.bf16.msra.mxu0 %v2615_v5 }
  0x81   : > { %1107 = vmatpush.bf16.msra.mxu1 %v2619_v9 }
  0xe2   : > { %v861_v11 = vpop.xlane.xlu0 %860 }
  0xe3   : > { %v871_v12 = vmul.f32 %v3876_v10, %v861_v11  ;;  %v2623_v11 = vor.u32 %v2888_v8, %v2622_v7 }
  0xe5   : > { %v3880_v13 = vsub.f32 %v3870_v2, %v871_v12  ;;  %1121 = vmatpush.bf16.msra.mxu2 %v2623_v11  ;;  %v2602_v12 = vld [vmem:[%s3857_s7 + $0x18] sm:$0xf] }
  0xe7   : > { %v875_v14 = vmul.f32 %v3880_v13, %v3880_v13 }
  0xe9   : > { %877 = vadd.xlane.f32.xlu1 %v875_v14  ;;  %v2884_v14 = vld [vmem:[%s3857_s7 + $0x20] sm:$0xf0]  ;;  %1122 = vmatpush.bf16.msra.mxu2 %v2611_v22 }
  0xea   : > { %v863_v15 = vpop.xlane.xlu0 %862 }
  0xeb   : > { %v872_v16 = vmul.f32 %v3876_v10, %v863_v15  ;;  %v2883_v15 = vld [vmem:[%s3857_s7 + $0x1c] sm:$0xf] }
  0xed   : > { %v3886_v17 = vsub.f32 %v3873_v3, %v872_v16  ;;  %v2603_v16 = vor.u32 %v2884_v14, %v2602_v12  ;;  %1123 = vmatpush.bf16.msra.mxu2 %v2599_v33 }
  0xef   : > { %v876_v18 = vmul.f32 %v3886_v17, %v3886_v17  ;;  %1094 = vmatpush.bf16.msra.mxu0 %v2603_v16 }
  0xf1   : > { %879 = vadd.xlane.f32.xlu1 %v876_v18  ;;  %v2604_v18 = vld [vmem:[%s3857_s7 + $0x24] sm:$0xf0]  ;;  %s4358_s7 = scalar_lea.vmem [#allocation8], %s3824_s1 }
  0xf2   : > { %v2607_v21 = vor.u32 %v2883_v15, %v2604_v18  ;;  %v3102_v51 = vld [vmem:[%s4358_s7] ss:$0 sm:$0xff] }
  0xf3   : > { %1095 = vmatpush.bf16.msra.mxu0 %v2591_v27  ;;  %v3971_v15 = vld [vmem:[#allocation6] ss:$0 sm:$0xff] }
  0xf4   : > { %1108 = vmatpush.bf16.msra.mxu1 %v2607_v21 }
  0xf8   : > { %1109 = vmatpush.bf16.msra.mxu1 %v2595_v32 }
 0x15c   : > { %v878_v26 = vpop.xlane.xlu1 %877 }
 0x15d   : > { %v881_v31 = vmul.f32 %v878_v26, %v3876_v10 }
 0x15f   : > { %v883_v34 = vadd.f32 1e-05, %v881_v31 }
 0x161   : > { %3112 = vrsqrt.f32 %v883_v34  ;;  %vm891_vm2 = vweird.f32 %v883_v34 }
 0x164   : > { %v880_v35 = vpop.xlane.xlu1 %879 }
 0x165   : > { %v882_v36 = vmul.f32 %v880_v35, %v3876_v10 }
 0x167   : > { %v3113_v37 = vpop.eup %3112  ;;  %v884_v38 = vadd.f32 1e-05, %v882_v36 }
 0x168   : > { %v886_v39 = vmul.f32 %v3113_v37, %v883_v34  ;;  %vm892_vm1 = vweird.f32 %v3113_v37 }
 0x169   : > { %3114 = vrsqrt.f32 %v884_v38  ;;  %vm893_vm3 = vmor %vm891_vm2, %vm892_vm1  ;;  %vm901_vm5 = vweird.f32 %v884_v38 }
 0x16a   : > { %v887_v40 = vmul.f32 %v3113_v37, %v886_v39 }
 0x16c   : > { %v888_v41 = vmul.f32 0.5, %v887_v40 }
 0x16e   : > { %v889_v42 = vsub.f32 1.5, %v888_v41 }
 0x16f   : > { %v3115_v43 = vpop.eup %3114 }
 0x170   : > { %v890_v44 = vmul.f32 %v3113_v37, %v889_v42  ;;  %v896_v45 = vmul.f32 %v3115_v43, %v884_v38  ;;  %vm902_vm4 = vweird.f32 %v3115_v43 }
 0x171   : > { %vm903_vm6 = vmor %vm901_vm5, %vm902_vm4 }
 0x172   : > { %v897_v46 = vmul.f32 %v3115_v43, %v896_v45  ;;  %v894_v47 = vsel %vm893_vm3, %v3113_v37, %v890_v44 }
 0x173   : > { %v905_v50 = vmul.f32 %v894_v47, %v3880_v13  ;;  %v952_v13 = vld [vmem:[%s3859_s18] sm:$0x7] }
 0x174   : > { %v898_v48 = vmul.f32 0.5, %v897_v46  ;;  %v954_v61 = vperm.slane %v952_v13, 0  ;;  %v955_v62 = vperm.slane %v952_v13, 1  ;;  %v956_v4 = vperm.slane %v952_v13, 2 }
 0x175   : > { %v911_v55 = vmul.f32 %v3102_v51, %v905_v50 }
 0x176   : > { %v899_v49 = vsub.f32 1.5, %v898_v48 }
 0x177   : > { %v917_v58 = vadd.f32 %v3103_v56, %v911_v55 }
 0x178   : > { %v900_v52 = vmul.f32 %v3115_v43, %v899_v49 }
 0x17a   : > { %v904_v53 = vsel %vm903_vm6, %v3115_v43, %v900_v52 }
 0x17b   : > { %v906_v54 = vmul.f32 %v904_v53, %v3886_v17 }
 0x17d   : > { %v912_v57 = vmul.f32 %v3102_v51, %v906_v54 }
 0x17f   : > { %v918_v59 = vadd.f32 %v3103_v56, %v912_v57 }
 0x181   : > { %v919_v60 = vpack.c.bf16 %v918_v59, %v917_v58 }
 0x183   : > { %1096 = vmatmul.bf16.vlgmr.msra.gmra.mxu0 %v919_v60  ;;  %1110 = vmatmul.bf16.vlgmr.msra.gmra.mxu1 %v919_v60 }
 0x184   : > { %1124 = vmatmul.bf16.vlgmr.msra.gmra.mxu2 %v919_v60 }
 0x200   : > { %v1097_v63 = vpop.f32.mrf.mxu0  ;;  %v1111_v0 = vpop.f32.mrf.mxu1 }
 0x201   : > { %v3950_v17 = vadd.f32 %v1097_v63, %v954_v61  ;;  %v3952_v1 = vadd.f32 %v1111_v0, %v955_v62 }
 0x203   : > { %2684 = vmatpush.xpose.msk.msra.mxu3 %vm1138_vm7, %v3952_v1  ;;  %1260 = vrot.lane.b32.xlu0 %v3950_v17, %s3563_s0 }
 0x206   : > { %2685 = vmatmul.msk.f32.vlgmr.msra.gmra.mxu3 %vm1138_vm7, %v3950_v17 }
 0x207   : > { %v1125_v5 = vpop.f32.mrf.mxu2 }
 0x208   : > { %v1113_v6 = vpop.f32.mrf.mxu1  ;;  %v1099_v7 = vpop.f32.mrf.mxu0  ;;  %v3960_v9 = vadd.f32 %v1125_v5, %v956_v4 }
 0x209   : > { %v1114_v8 = vadd.f32 %v1113_v6, %v955_v62  ;;  %v3963_v11 = vadd.f32 %v1099_v7, %v954_v61 }
 0x20b   : > { %2686 = vmatpush.xpose.msk.msrb.mxu3 %vm1138_vm7, %v1114_v8 }
 0x20e   : > { %2687 = vmatmul.msk.f32.vlgmr.msrb.gmra.mxu3 %vm1138_vm7, %v3963_v11 }
 0x20f   : > { %1232 = vmatpush.msra.mxu3 %v3960_v9  ;;  %v1127_v12 = vpop.f32.mrf.mxu2 }
 0x210   : > { %v3968_v14 = vadd.f32 %v1127_v12, %v956_v4 }
 0x212   : > { %1255 = vmatpush.msrb.mxu3 %v3968_v14 }
 0x275   : > { %v1261_v34 = vpop.permute.xlu0 %1260 }
 0x289   : > { %v1162_v16 = vpop.f32.mrf.mxu3 }
 0x28a   : > { %v1163_v18 = vadd.f32 %v3971_v15, %v1162_v16 }
 0x28c   : > { %v1192_v19 = vsel %vm1191_vm8, %v1163_v18, -inf }
 0x28d   : > { %1193 = vmax.xlane.f32.xlu2 %v1192_v19 }
 0x291   : > { %v1188_v21 = vpop.f32.mrf.mxu3 }
 0x292   : > { %v1189_v22 = vadd.f32 %v3975_v20, %v1188_v21 }
 0x294   : > { %v1195_v23 = vsel %vm1191_vm8, %v1189_v22, -inf }
 0x295   : > { %1196 = vmax.xlane.f32.xlu2 %v1195_v23 }
 0x2ad   : > { %1262 = vrot.lane.b32.xlu2 %v3952_v1, %s3563_s0 }
 0x2b5   : > { %1288 = vrot.lane.b32.xlu2 %v3963_v11, %s3563_s0 }
 0x2bd   : > { %1392 = vrot.lane.b32.xlu2 %v3950_v17, %s3564_s4 }
 0x2c5   : > { %1422 = vrot.lane.b32.xlu2 %v1114_v8, %s3564_s4 }
 0x2cd   : > { %1552 = vrot.lane.b32.xlu2 %v1114_v8, %s3565_s28 }
 0x300   : > { %v1194_v24 = vpop.xlane.xlu2 %1193 }
 0x301   : > { %v1198_v25 = vsub.f32 %v1163_v18, %v1194_v24 }
 0x303   : > { %v1200_v26 = vmul.f32 1.442695, %v1198_v25 }
 0x305   : > { %3116 = vpow2.f32 %v1200_v26 }
 0x308   : > { %v1197_v27 = vpop.xlane.xlu2 %1196 }
 0x309   : > { %v1199_v28 = vsub.f32 %v1189_v22, %v1197_v27 }
 0x30b   : > { %v3117_v29 = vpop.eup %3116  ;;  %v1202_v30 = vmul.f32 1.442695, %v1199_v28 }
 0x30c   : > { %v1204_v31 = vsel %vm1191_vm8, %v3117_v29, 0.0 }
 0x30d   : > { %3118 = vpow2.f32 %v1202_v30  ;;  %1205 = vadd.xlane.f32.xlu0 %v1204_v31 }
 0x310   : > { %v1263_v36 = vpop.permute.xlu2 %1262 }
 0x313   : > { %v3119_v32 = vpop.eup %3118 }
 0x314   : > { %v1207_v33 = vsel %vm1191_vm8, %v3119_v32, 0.0 }
 0x315   : > { %1208 = vadd.xlane.f32.xlu1 %v1207_v33 }
 0x318   : > { %v1289_v40 = vpop.permute.xlu2 %1288 }
 0x320   : > { %v1393_v43 = vpop.permute.xlu2 %1392 }
 0x321   : > { %1394 = vrot.lane.b32.xlu0 %v3952_v1, %s3564_s4 }
 0x328   : > { %v1423_v46 = vpop.permute.xlu2 %1422 }
 0x32e   : > { %1290 = vrot.lane.b32.xlu1 %v1114_v8, %s3563_s0 }
 0x330   : > { %v1553_v47 = vpop.permute.xlu2 %1552 }
 0x380   : > { %v1206_v35 = vpop.xlane.xlu0 %1205 }
 0x381   : > { %3120 = vrcp.f32 %v1206_v35 }
 0x387   : > { %v3121_v37 = vpop.eup %3120 }
 0x388   : > { %v1212_v38 = vmul.f32 %v3121_v37, %v3117_v29  ;;  %v1209_v39 = vpop.xlane.xlu1 %1208 }
 0x389   : > { %3122 = vrcp.f32 %v1209_v39 }
 0x38a   : > { %2688 = vmatmul.msk.f32.vlgmr.msra.gmra.mxu3 %vm1191_vm8, %v1212_v38 }
 0x38b   : > { %2690 = vmatpush.xpose.msk.msra.mxu3 %vm1138_vm7, %v1263_v36 }
 0x38f   : > { %v3123_v41 = vpop.eup %3122 }
 0x390   : > { %v1213_v42 = vmul.f32 %v3123_v41, %v3119_v32 }
 0x392   : > { %2689 = vmatmul.msk.f32.vlgmr.msrb.gmra.mxu3 %vm1191_vm8, %v1213_v42 }
 0x393   : > { %v1395_v45 = vpop.permute.xlu0 %1394 }
 0x39a   : > { %2691 = vmatmul.msk.f32.vlgmr.msra.gmra.mxu3 %vm1138_vm7, %v1261_v34 }
 0x3a0   : > { %v1291_v44 = vpop.permute.xlu1 %1290 }
 0x3a1   : > { %2692 = vmatpush.xpose.msk.msrb.mxu3 %vm1138_vm7, %v1291_v44 }
 0x3a4   : > { %2693 = vmatmul.msk.f32.vlgmr.msrb.gmra.mxu3 %vm1138_vm7, %v1289_v40 }
 0x3a5   : > { %2696 = vmatpush.xpose.msk.msra.mxu3 %vm1138_vm7, %v1395_v45 }
 0x3a9   : > { %2698 = vmatpush.xpose.msk.msrb.mxu3 %vm1138_vm7, %v1423_v46 }
 0x3ac   : > { %2697 = vmatmul.msk.f32.vlgmr.msra.gmra.mxu3 %vm1138_vm7, %v1393_v43 }
 0x3ad   : > { %2704 = vmatpush.xpose.msk.msra.mxu3 %vm1138_vm7, %v1553_v47 }
 0x40d   : > { %v4002_v48 = vpop.f32.mrf.mxu3 }
 0x415   : > { %v4004_v49 = vpop.f32.mrf.mxu3 }
 0x41d   : > { %v1285_v50 = vpop.f32.mrf.mxu3 }
 0x41e   : > { %v1286_v51 = vadd.f32 %v3971_v15, %v1285_v50 }
 0x420   : > { %v1316_v52 = vsel %vm1191_vm8, %v1286_v51, -inf }
 0x421   : > { %1317 = vmax.xlane.f32.xlu1 %v1316_v52 }
 0x427   : > { %v1313_v53 = vpop.f32.mrf.mxu3 }
 0x428   : > { %v1314_v57 = vadd.f32 %v3975_v20, %v1313_v53 }
 0x42a   : > { %v1319_v58 = vsel %vm1191_vm8, %v1314_v57, -inf }
 0x42f   : > { %v1417_v54 = vpop.f32.mrf.mxu3 }
 0x430   : > { %v1418_v55 = vadd.f32 %v3971_v15, %v1417_v54  ;;  %v3082_v54 = vpack.i.bf16 %v3968_v14, %v3960_v9 }
 0x432   : > { %v1448_v56 = vsel %vm1191_vm8, %v1418_v55, -inf }
 0x433   : > { %1449 = vmax.xlane.f32.xlu0 %v1448_v56 }
 0x43a   : > { %1420 = vrot.lane.b32.xlu1 %v3963_v11, %s3564_s4 }
 0x447   : > { %1339 = vrot.lane.b32.xlu0 %v3960_v9, %s3563_s0 }
 0x44f   : > { %1470 = vrot.lane.b32.xlu0 %v3960_v9, %s3564_s4 }
 0x457   : > { %1550 = vrot.lane.b32.xlu0 %v3963_v11, %s3565_s28 }
 0x481   : > { %1320 = vmax.xlane.f32.xlu0 %v1319_v58 }
 0x494   : > { %v1318_v59 = vpop.xlane.xlu1 %1317 }
 0x495   : > { %v1322_v60 = vsub.f32 %v1286_v51, %v1318_v59 }
 0x497   : > { %v1324_v13 = vmul.f32 1.442695, %v1322_v60 }
 0x499   : > { %3124 = vpow2.f32 %v1324_v13 }
 0x49f   : > { %v3125_v61 = vpop.eup %3124 }
 0x4a0   : > { %v1328_v62 = vsel %vm1191_vm8, %v3125_v61, 0.0 }
 0x4a1   : > { %1329 = vadd.xlane.f32.xlu2 %v1328_v62 }
 0x4a6   : > { %v1450_v63 = vpop.xlane.xlu0 %1449 }
 0x4a7   : > { %v1454_v0 = vsub.f32 %v1418_v55, %v1450_v63 }
 0x4a9   : > { %v1456_v4 = vmul.f32 1.442695, %v1454_v0 }
 0x4ab   : > { %3126 = vpow2.f32 %v1456_v4 }
 0x4ac   : > { %v1421_v5 = vpop.permute.xlu1 %1420 }
 0x4ad   : > { %2699 = vmatmul.msk.f32.vlgmr.msrb.gmra.mxu3 %vm1138_vm7, %v1421_v5 }
 0x4b1   : > { %v3127_v6 = vpop.eup %3126 }
 0x4b2   : > { %v1460_v7 = vsel %vm1191_vm8, %v3127_v6, 0.0 }
 0x4b3   : > { %1461 = vadd.xlane.f32.xlu1 %v1460_v7 }
 0x4b9   : > { %1522 = vrot.lane.b32.xlu2 %v3950_v17, %s3565_s28  ;;  %v1340_v8 = vpop.permute.xlu0 %1339 }
 0x4ba   : > { %1360 = vmatpush.msrb.mxu0 %v1340_v8 }
 0x4c1   : > { %v1471_v11 = vpop.permute.xlu0 %1470 }
 0x4c2   : > { %1491 = vmatpush.msra.mxu0 %v1471_v11 }
 0x4c9   : > { %v1551_v12 = vpop.permute.xlu0 %1550 }
 0x4ca   : > { %2705 = vmatmul.msk.f32.vlgmr.msra.gmra.mxu3 %vm1138_vm7, %v1551_v12 }
 0x4cc   : > { %1524 = vrot.lane.b32.xlu1 %v3952_v1, %s3565_s28 }
 0x4f4   : > { %v1321_v22 = vpop.xlane.xlu0 %1320 }
 0x4f5   : > { %v1323_v17 = vsub.f32 %v1314_v57, %v1321_v22  ;;  %v2907_v22 = vld [vmem:[%s3861_s14 + $0x18] sm:$0xff] }
 0x4f7   : > { %v1326_v24 = vmul.f32 1.442695, %v1323_v17 }
 0x514   : > { %v1330_v16 = vpop.xlane.xlu2 %1329 }
 0x515   : > { %3128 = vrcp.f32 %v1330_v16  ;;  %v2911_v16 = vld [vmem:[%s3861_s14 + $0x38] sm:$0xff] }
 0x516   : > { %1753 = vmatpush.bf16.msrb.mxu2 %v2911_v16  ;;  %v2921_v16 = vld [vmem:[%s3865_s21 + $0x44] sm:$0xf0] }
 0x51b   : > { %v3129_v18 = vpop.eup %3128 }
 0x51c   : > { %v1336_v19 = vmul.f32 %v3129_v18, %v3125_v61  ;;  %v1523_v31 = vpop.permute.xlu2 %1522  ;;  %v2910_v18 = vld [vmem:[%s3861_s14 + $0x30] sm:$0xff] }
 0x51d   : > { %1754 = vmatpush.bf16.msrb.mxu2 %v2910_v18  ;;  %v2920_v18 = vld [vmem:[%s3865_s21 + $0x44] sm:$0xf] }
 0x51e   : > { %2694 = vmatmul.msk.f32.vlgmr.msrb.gmra.mxu0 %vm1191_vm8, %v1336_v19  ;;  %v2909_v19 = vld [vmem:[%s3861_s14 + $0x28] sm:$0xff] }
 0x521   : > { %1755 = vmatpush.bf16.msrb.mxu2 %v2909_v19 }
 0x526   : > { %v1462_v21 = vpop.xlane.xlu1 %1461 }
 0x527   : > { %3130 = vrcp.f32 %v1462_v21  ;;  %v2908_v21 = vld [vmem:[%s3861_s14 + $0x20] sm:$0xff] }
 0x528   : > { %3132 = vpow2.f32 %v1326_v24  ;;  %1756 = vmatpush.bf16.msrb.mxu2 %v2908_v21  ;;  %v2776_v21 = vld [vmem:[%s3865_s21 + $0x48] sm:$0xf0] }
 0x52c   : > { %1757 = vmatpush.bf16.msrb.mxu2 %v2907_v22  ;;  %v2779_v22 = vor.u32 %v2920_v18, %v2776_v21 }
 0x52d   : > { %v3131_v23 = vpop.eup %3130 }
 0x52e   : > { %v1468_v25 = vmul.f32 %v3131_v23, %v3127_v6  ;;  %v3133_v28 = vpop.eup %3132 }
 0x52f   : > { %v1331_v29 = vsel %vm1191_vm8, %v3133_v28, 0.0 }
 0x530   : > { %v1445_v26 = vpop.f32.mrf.mxu3  ;;  %2700 = vmatmul.msk.f32.vlgmr.msra.gmra.mxu0 %vm1191_vm8, %v1468_v25 }
 0x531   : > { %v1446_v27 = vadd.f32 %v3975_v20, %v1445_v26 }
 0x533   : > { %v1451_v1 = vsel %vm1191_vm8, %v1446_v27, -inf }
 0x534   : > { %1452 = vmax.xlane.f32.xlu1 %v1451_v1  ;;  %v2905_v1 = vld [vmem:[%s3861_s14 + $0x8] sm:$0xff] }
 0x53c   : > { %1332 = vadd.xlane.f32.xlu1 %v1331_v29 }
 0x53e   : > { %v1525_v30 = vpop.permute.xlu1 %1524 }
 0x53f   : > { %2702 = vmatpush.xpose.msk.msrb.mxu0 %vm1138_vm7, %v1525_v30 }
 0x542   : > { %2703 = vmatmul.msk.f32.vlgmr.msrb.gmra.mxu0 %vm1138_vm7, %v1523_v31 }
 0x54d   : > { %v1575_v32 = vpop.f32.mrf.mxu3 }
 0x54e   : > { %v1576_v33 = vadd.f32 %v3975_v20, %v1575_v32 }
 0x550   : > { %v1581_v34 = vsel %vm1191_vm8, %v1576_v33, -inf }
 0x551   : > { %1582 = vmax.xlane.f32.xlu0 %v1581_v34 }
 0x565   : > { %1366 = vrot.lane.b32.xlu0 %v3968_v14, %s3563_s0 }
 0x59b   : > { %v1362_v35 = vpop.f32.mrf.mxu0 }
 0x5a7   : > { %v1453_v36 = vpop.xlane.xlu1 %1452 }
 0x5a8   : > { %v1455_v38 = vsub.f32 %v1446_v27, %v1453_v36  ;;  %v2906_v27 = vld [vmem:[%s3861_s14 + $0x10] sm:$0xff] }
 0x5a9   : > { %1758 = vmatpush.bf16.msrb.mxu2 %v2906_v27 }
 0x5aa   : > { %v1458_v39 = vmul.f32 1.442695, %v1455_v38 }
 0x5ac   : > { %3134 = vpow2.f32 %v1458_v39 }
 0x5ad   : > { %v4039_v37 = vpop.f32.mrf.mxu0  ;;  %1759 = vmatpush.bf16.msrb.mxu2 %v2905_v1  ;;  %v2758_v1 = vld [vmem:[%s3865_s21 + $0x20] sm:$0xf] }
 0x5af   : > { %v1333_v47 = vpop.xlane.xlu1 %1332 }
 0x5b2   : > { %v3135_v44 = vpop.eup %3134 }
 0x5b3   : > { %v1463_v46 = vsel %vm1191_vm8, %v3135_v44, 0.0 }
 0x5bf   : > { %v1547_v40 = vpop.f32.mrf.mxu0 }
 0x5c0   : > { %v1548_v41 = vadd.f32 %v3971_v15, %v1547_v40 }
 0x5c2   : > { %v1578_v42 = vsel %vm1191_vm8, %v1548_v41, -inf }
 0x5c3   : > { %1579 = vmax.xlane.f32.xlu2 %v1578_v42 }
 0x5c4   : > { %v1583_v20 = vpop.xlane.xlu0 %1582 }
 0x5c5   : > { %v1585_v43 = vsub.f32 %v1576_v33, %v1583_v20 }
 0x5c7   : > { %v1588_v45 = vmul.f32 1.442695, %v1585_v43 }
 0x5c9   : > { %3136 = vpow2.f32 %v1588_v45 }
 0x5ca   : > { %3138 = vrcp.f32 %v1333_v47 }
 0x5cb   : > { %1464 = vadd.xlane.f32.xlu2 %v1463_v46 }
 0x5cf   : > { %v3137_v50 = vpop.eup %3136 }
 0x5d0   : > { %v1593_v51 = vsel %vm1191_vm8, %v3137_v50, 0.0  ;;  %v3139_v52 = vpop.eup %3138 }
 0x5d1   : > { %v1337_v53 = vmul.f32 %v3139_v52, %v3133_v28  ;;  %v2904_v28 = vld [vmem:[%s3861_s14] sm:$0xff] }
 0x5d2   : > { %1760 = vmatpush.bf16.msrb.mxu2 %v2904_v28  ;;  %v2917_v28 = vld [vmem:[%s3865_s21 + $0x24] sm:$0xf0] }
 0x5d3   : > { %1594 = vadd.xlane.f32.xlu2 %v1593_v51 }
 0x5d7   : > { %v1367_v15 = vpop.permute.xlu0 %1366 }
 0x5d8   : > { %1387 = vmatpush.msrb.mxu1 %v1367_v15 }
 0x5d9   : > { %2695 = vmatmul.msk.f32.vlgmr.msrb.gmra.mxu1 %vm1191_vm8, %v1337_v53 }
 0x5eb   : > { %3083 = vrot.lane.b32.xlu2 %v3082_v54, %s3565_s28 }
 0x636   : > { %v1580_v55 = vpop.xlane.xlu2 %1579 }
 0x637   : > { %v1584_v56 = vsub.f32 %v1548_v41, %v1580_v55 }
 0x639   : > { %v1586_v57 = vmul.f32 1.442695, %v1584_v56  ;;  %v2798_v56 = vld [vmem:[%s3865_s21 + $0x70] sm:$0xf] }
 0x63b   : > { %3140 = vpow2.f32 %v1586_v57  ;;  %v2927_v57 = vld [vmem:[%s3865_s21 + $0x74] sm:$0xf0] }
 0x63e   : > { %v1465_v58 = vpop.xlane.xlu2 %1464 }
 0x641   : > { %v3141_v59 = vpop.eup %3140 }
 0x642   : > { %v1590_v60 = vsel %vm1191_vm8, %v3141_v59, 0.0 }
 0x643   : > { %1591 = vadd.xlane.f32.xlu1 %v1590_v60  ;;  %v2800_v60 = vld [vmem:[%s3865_s21 + $0x78] sm:$0xf0] }
 0x646   : > { %v1595_v13 = vpop.xlane.xlu2 %1594 }
 0x64e   : > { %v3084_v61 = vpop.permute.xlu2 %3083 }
 0x64f   : > { %v3085_v62 = vunpack.i.l.bf16 %v3084_v61  ;;  %v3086_v11 = vunpack.i.h.bf16 %v3084_v61  ;;  %v2790_v61 = vld [vmem:[%s3865_s21 + $0x60] sm:$0xf] }
 0x651   : > { %1621 = vmatpush.msra.mxu0 %v3085_v62  ;;  %v2925_v62 = vld [vmem:[%s3865_s21 + $0x64] sm:$0xf0] }
 0x656   : > { %v1389_v63 = vpop.f32.mrf.mxu1 }
 0x657   : > { %v3087_v0 = vpack.i.bf16 %v1389_v63, %v1362_v35  ;;  %v2924_v63 = vld [vmem:[%s3865_s21 + $0x64] sm:$0xf] }
 0x659   : > { %3088 = vrot.lane.b32.xlu0 %v3087_v0, %s3565_s28  ;;  %v2791_v0 = vor.u32 %v2925_v62, %v2790_v61  ;;  %v3107_v62 = vld [vmem:[%s728_s20] ss:$0 sm:$0xff] }
 0x65c   : > { %1496 = vrot.lane.b32.xlu1 %v3968_v14, %s3564_s4 }
 0x6b6   : > { %v1592_v9 = vpop.xlane.xlu1 %1591 }
 0x6b7   : > { %3142 = vrcp.f32 %v1592_v9  ;;  %v2792_v9 = vld [vmem:[%s3865_s21 + $0x68] sm:$0xf0] }
 0x6b8   : > { %3144 = vrcp.f32 %v1465_v58  ;;  %v2926_v58 = vld [vmem:[%s3865_s21 + $0x74] sm:$0xf] }
 0x6b9   : > { %3146 = vrcp.f32 %v1595_v13  ;;  %v2803_v13 = vor.u32 %v2926_v58, %v2800_v60 }
 0x6bb   : > { %1938 = vmatpush.bf16.msrb.mxu0 %v2803_v13 }
 0x6bd   : > { %v3143_v4 = vpop.eup %3142 }
 0x6be   : > { %v1598_v5 = vmul.f32 %v3143_v4, %v3141_v59  ;;  %v3145_v6 = vpop.eup %3144  ;;  %v2799_v59 = vor.u32 %v2927_v57, %v2798_v56  ;;  %v2795_v4 = vor.u32 %v2924_v63, %v2792_v9 }
 0x6bf   : > { %v1469_v7 = vmul.f32 %v3145_v6, %v3135_v44  ;;  %v3147_v14 = vpop.eup %3146  ;;  %v3106_v44 = vld [vmem:[%s719_s22] ss:$0 sm:$0xff]  ;;  %v2923_v6 = vld [vmem:[%s3865_s21 + $0x54] sm:$0xf0] }
 0x6c0   : > { %2706 = vmatmul.msk.f32.vlgmr.msra.gmra.mxu0 %vm1191_vm8, %v1598_v5  ;;  %v1599_v12 = vmul.f32 %v3147_v14, %v3137_v50  ;;  %1924 = vmatpush.bf16.msrb.mxu3 %v2799_v59  ;;  %v2782_v5 = vld [vmem:[%s3865_s21 + $0x50] sm:$0xf] }
 0x6c1   : > { %1939 = vmatpush.bf16.msrb.mxu0 %v2795_v4 }
 0x6c4   : > { %1925 = vmatpush.bf16.msrb.mxu3 %v2791_v0 }
 0x6cb   : > { %v3089_v29 = vpop.permute.xlu0 %3088 }
 0x6cc   : > { %v3091_v31 = vunpack.i.h.bf16 %v3089_v29  ;;  %v3090_v32 = vunpack.i.l.bf16 %v3089_v29  ;;  %v2916_v29 = vld [vmem:[%s3865_s21 + $0x24] sm:$0xf] }
 0x6ce   : > { %v1497_v8 = vpop.permute.xlu1 %1496  ;;  %v1677_v36 = vsel %vm1138_vm7, %v4004_v49, %v3091_v31  ;;  %v2760_v31 = vld [vmem:[%s3865_s21 + $0x28] sm:$0xf0] }
 0x6cf   : > { %1517 = vmatpush.msra.mxu1 %v1497_v8  ;;  %v2783_v8 = vor.u32 %v2923_v6, %v2782_v5  ;;  %v3108_v5 = vld [vmem:[%s841_s3] ss:$0 sm:$0xff]  ;;  %s4365_s3 = sld [smem:[#allocation22_spill]] }
 0x6d0   : > { %2701 = vmatmul.msk.f32.vlgmr.msra.gmra.mxu1 %vm1191_vm8, %v1469_v7  ;;  %v2922_v7 = vld [vmem:[%s3865_s21 + $0x54] sm:$0xf] }
 0x6d1   : > { %1647 = vmatpush.msrb.mxu1 %v3086_v11  ;;  %v2784_v11 = vld [vmem:[%s3865_s21 + $0x58] sm:$0xf0]  ;;  %1926 = vmatpush.bf16.msrb.mxu3 %v2783_v8 }
 0x6d2   : > { %v2787_v14 = vor.u32 %v2922_v7, %v2784_v11 }
 0x6d4   : > { %1940 = vmatpush.bf16.msrb.mxu0 %v2787_v14 }
 0x6d5   : > { %p2872_p3 = scmp.ne.s32.totalorder %s4365_s3, 1 }
 0x6d8   : > { %2707 = vmatmul.msk.f32.vlgmr.msrb.gmra.mxu1 %vm1191_vm8, %v1599_v12  ;;  %v2774_v12 = vld [vmem:[%s3865_s21 + $0x40] sm:$0xf]  ;;  %1941 = vmatpush.bf16.msrb.mxu0 %v2779_v22 }
 0x6d9   : > { %v2775_v19 = vor.u32 %v2921_v16, %v2774_v12 }
 0x6db   : > { %1927 = vmatpush.bf16.msrb.mxu3 %v2775_v19 }
 0x73d   : > { %v1623_v24 = vpop.f32.mrf.mxu0 }
 0x74d   : > { %v1519_v17 = vpop.f32.mrf.mxu1 }
 0x74e   : > { %v3092_v23 = vpack.i.bf16 %v1519_v17, %v4039_v37  ;;  %v1676_v37 = vsel %vm1138_vm7, %v4002_v48, %v3090_v32  ;;  %v2766_v17 = vld [vmem:[%s3865_s21 + $0x30] sm:$0xf]  ;;  %v2763_v32 = vor.u32 %v2916_v29, %v2760_v31 }
 0x74f   : > { %v2942_v29 = vld [vmem:[%s3867_s9 + $0x70] sm:$0xff] }
 0x750   : > { %3093 = vrot.lane.b32.xlu0 %v3092_v23, %s3564_s4  ;;  %v2919_v23 = vld [vmem:[%s3865_s21 + $0x34] sm:$0xf0] }
 0x755   : > { %v1649_v25 = vpop.f32.mrf.mxu1 }
 0x756   : > { %v3097_v26 = vpack.i.bf16 %v1649_v25, %v1623_v24  ;;  %v2918_v24 = vld [vmem:[%s3865_s21 + $0x34] sm:$0xf]  ;;  %v2767_v25 = vor.u32 %v2919_v23, %v2766_v17  ;;  %v2943_v23 = vld [vmem:[%s3867_s9 + $0x78] sm:$0xff] }
 0x757   : > { %2276 = vmatpush.bf16.msra.mxu2 %v2943_v23 }
 0x758   : > { %3098 = vrot.lane.b32.xlu1 %v3097_v26, %s3563_s0  ;;  %v2768_v26 = vld [vmem:[%s3865_s21 + $0x38] sm:$0xf0]  ;;  %1928 = vmatpush.bf16.msrb.mxu3 %v2767_v25 }
 0x759   : > { %v2771_v27 = vor.u32 %v2918_v24, %v2768_v26 }
 0x75b   : > { %1942 = vmatpush.bf16.msrb.mxu0 %v2771_v27  ;;  %2277 = vmatpush.bf16.msra.mxu2 %v2942_v29  ;;  %v2931_v29 = vld [vmem:[%s3867_s9 + $0x18] sm:$0xff] }
 0x75f   : > { %1943 = vmatpush.bf16.msrb.mxu0 %v2763_v32 }
 0x7c2   : > { %v3094_v30 = vpop.permute.xlu0 %3093 }
 0x7c3   : > { %v3096_v33 = vunpack.i.h.bf16 %v3094_v30  ;;  %v3095_v34 = vunpack.i.l.bf16 %v3094_v30  ;;  %v2759_v30 = vor.u32 %v2917_v28, %v2758_v1 }
 0x7c5   : > { %v1680_v40 = vsel %vm1678_vm9, %v1677_v36, %v3096_v33  ;;  %v1679_v41 = vsel %vm1678_vm9, %v1676_v37, %v3095_v34  ;;  %1929 = vmatpush.bf16.msrb.mxu3 %v2759_v30  ;;  %v2750_v33 = vld [vmem:[%s3865_s21 + $0x10] sm:$0xf]  ;;  %v2915_v34 = vld [vmem:[%s3865_s21 + $0x14] sm:$0xf0]  ;;  %v2752_v37 = vld [vmem:[%s3865_s21 + $0x18] sm:$0xf0] }
 0x7c6   : > { %v2751_v36 = vor.u32 %v2915_v34, %v2750_v33  ;;  %v2935_v34 = vld [vmem:[%s3867_s9 + $0x38] sm:$0xff] }
 0x7c7   : > { %2262 = vmatpush.bf16.msra.mxu1 %v2935_v34  ;;  %v2937_v34 = vld [vmem:[%s3867_s9 + $0x48] sm:$0xff] }
 0x7c9   : > { %1930 = vmatpush.bf16.msrb.mxu3 %v2751_v36 }
 0x7ca   : > { %v3099_v35 = vpop.permute.xlu1 %3098 }
 0x7cb   : > { %v3101_v38 = vunpack.i.h.bf16 %v3099_v35  ;;  %v3100_v39 = vunpack.i.l.bf16 %v3099_v35  ;;  %v2914_v35 = vld [vmem:[%s3865_s21 + $0x14] sm:$0xf] }
 0x7cd   : > { %v1682_v42 = vsel %vm1681_vm10, %v1679_v41, %v3100_v39  ;;  %v1683_v20 = vsel %vm1681_vm10, %v1680_v40, %v3101_v38  ;;  %v2742_v38 = vld [vmem:[%s3865_s21] sm:$0xf]  ;;  %v2913_v39 = vld [vmem:[%s3865_s21 + $0x4] sm:$0xf0]  ;;  %v2755_v41 = vor.u32 %v2914_v35, %v2752_v37 }
 0x7ce   : > { %v1684_v43 = vpack.c.bf16 %v1683_v20, %v1682_v42  ;;  %v2912_v42 = vld [vmem:[%s3865_s21 + $0x4] sm:$0xf]  ;;  %v2744_v20 = vld [vmem:[%s3865_s21 + $0x8] sm:$0xf0] }
 0x7cf   : > { %1944 = vmatpush.bf16.msrb.mxu0 %v2755_v41 }
 0x7d0   : > { %1761 = vmatmul.bf16.vlgmr.msrb.gmra.mxu2 %v1684_v43 }
 0x853   : > { %v1762_v45 = vpop.f32.mrf.mxu2 }
 0x854   : > { %v1763_v46 = vadd.f32 %v3106_v44, %v1762_v45  ;;  %v2747_v45 = vor.u32 %v2912_v42, %v2744_v20 }
 0x856   : > { %v4074_v47 = vadd.f32 %v1763_v46, %v3870_v2  ;;  %1945 = vmatpush.bf16.msrb.mxu0 %v2747_v45  ;;  %v2934_v45 = vld [vmem:[%s3867_s9 + $0x30] sm:$0xff] }
 0x857   : > { %2263 = vmatpush.bf16.msra.mxu1 %v2934_v45 }
 0x858   : > { %1769 = vadd.xlane.f32.xlu0 %v4074_v47 }
 0x85b   : > { %v1764_v48 = vpop.f32.mrf.mxu2 }
 0x85c   : > { %v1765_v49 = vadd.f32 %v3106_v44, %v1764_v48  ;;  %v2743_v44 = vor.u32 %v2913_v39, %v2742_v38 }
 0x85e   : > { %v4078_v50 = vadd.f32 %v1765_v49, %v3873_v3  ;;  %1931 = vmatpush.bf16.msrb.mxu3 %v2743_v44 }
 0x860   : > { %1771 = vadd.xlane.f32.xlu2 %v4078_v50 }
 0x8cb   : > { %v1770_v51 = vpop.xlane.xlu0 %1769 }
 0x8cc   : > { %v1773_v52 = vmul.f32 %v1770_v51, %v3876_v10 }
 0x8ce   : > { %v4083_v15 = vsub.f32 %v4074_v47, %v1773_v52 }
 0x8d0   : > { %v1777_v2 = vmul.f32 %v4083_v15, %v4083_v15 }
 0x8d2   : > { %1779 = vadd.xlane.f32.xlu1 %v1777_v2 }
 0x8d3   : > { %v1772_v53 = vpop.xlane.xlu2 %1771 }
 0x8d4   : > { %v1774_v3 = vmul.f32 %v1772_v53, %v3876_v10 }
 0x8d6   : > { %v4089_v54 = vsub.f32 %v4078_v50, %v1774_v3 }
 0x8d8   : > { %v1778_v55 = vmul.f32 %v4089_v54, %v4089_v54 }
 0x8da   : > { %1781 = vadd.xlane.f32.xlu0 %v1778_v55 }
 0x945   : > { %v1780_v40 = vpop.xlane.xlu1 %1779 }
 0x946   : > { %v1783_v43 = vmul.f32 %v1780_v40, %v3876_v10  ;;  %v2941_v40 = vld [vmem:[%s3867_s9 + $0x68] sm:$0xff] }
 0x947   : > { %2278 = vmatpush.bf16.msra.mxu2 %v2941_v40 }
 0x948   : > { %v1785_v46 = vadd.f32 1e-05, %v1783_v43 }
 0x94a   : > { %3148 = vrsqrt.f32 %v1785_v46  ;;  %vm1793_vm12 = vweird.f32 %v1785_v46 }
 0x94d   : > { %v1782_v48 = vpop.xlane.xlu0 %1781 }
 0x94e   : > { %v1784_v49 = vmul.f32 %v1782_v48, %v3876_v10 }
 0x950   : > { %v3149_v51 = vpop.eup %3148  ;;  %v1786_v52 = vadd.f32 1e-05, %v1784_v49 }
 0x951   : > { %v1788_v2 = vmul.f32 %v3149_v51, %v1785_v46  ;;  %vm1794_vm11 = vweird.f32 %v3149_v51 }
 0x952   : > { %3150 = vrsqrt.f32 %v1786_v52  ;;  %vm1795_vm13 = vmor %vm1793_vm12, %vm1794_vm11  ;;  %vm1803_vm15 = vweird.f32 %v1786_v52 }
 0x953   : > { %v1789_v53 = vmul.f32 %v3149_v51, %v1788_v2 }
 0x955   : > { %v1790_v3 = vmul.f32 0.5, %v1789_v53 }
 0x957   : > { %v1791_v55 = vsub.f32 1.5, %v1790_v3 }
 0x958   : > { %v3151_v56 = vpop.eup %3150 }
 0x959   : > { %v1792_v57 = vmul.f32 %v3149_v51, %v1791_v55  ;;  %v1798_v58 = vmul.f32 %v3151_v56, %v1786_v52  ;;  %vm1804_vm14 = vweird.f32 %v3151_v56  ;;  %v2940_v55 = vld [vmem:[%s3867_s9 + $0x60] sm:$0xff] }
 0x95a   : > { %vm1805_vm0 = vmor %vm1803_vm15, %vm1804_vm14  ;;  %2279 = vmatpush.bf16.msra.mxu2 %v2940_v55 }
 0x95b   : > { %v1799_v59 = vmul.f32 %v3151_v56, %v1798_v58  ;;  %v1796_v60 = vsel %vm1795_vm13, %v3149_v51, %v1792_v57 }
 0x95c   : > { %v1807_v10 = vmul.f32 %v1796_v60, %v4083_v15  ;;  %v1838_v15 = vld [vmem:[%s3855_s6] sm:$0x3]  ;;  %v2933_v60 = vld [vmem:[%s3867_s9 + $0x28] sm:$0xff] }
 0x95d   : > { %v1800_v13 = vmul.f32 0.5, %v1799_v59  ;;  %v1841_v14 = vperm.slane %v1838_v15, 1  ;;  %v1840_v18 = vperm.slane %v1838_v15, 0  ;;  %2264 = vmatpush.bf16.msra.mxu1 %v2933_v60 }
 0x95e   : > { %v1813_v4 = vmul.f32 %v3107_v62, %v1807_v10 }
 0x95f   : > { %v1801_v61 = vsub.f32 1.5, %v1800_v13 }
 0x960   : > { %v1819_v7 = vadd.f32 %v3108_v5, %v1813_v4  ;;  %v2939_v4 = vld [vmem:[%s3867_s9 + $0x58] sm:$0xff] }
 0x961   : > { %v1802_v63 = vmul.f32 %v3151_v56, %v1801_v61  ;;  %2280 = vmatpush.bf16.msra.mxu2 %v2939_v4  ;;  %v2928_v4 = vld [vmem:[%s3867_s9] sm:$0xff] }
 0x963   : > { %v1806_v0 = vsel %vm1805_vm0, %v3151_v56, %v1802_v63 }
 0x964   : > { %v1808_v9 = vmul.f32 %v1806_v0, %v4089_v54 }
 0x966   : > { %v1814_v6 = vmul.f32 %v3107_v62, %v1808_v9 }
 0x968   : > { %v1820_v8 = vadd.f32 %v3108_v5, %v1814_v6 }
 0x96a   : > { %v1821_v11 = vpack.c.bf16 %v1820_v8, %v1819_v7 }
 0x96c   : > { %1932 = vmatmul.bf16.vlgmr.msrb.gmra.mxu3 %v1821_v11  ;;  %1946 = vmatmul.bf16.vlgmr.msrb.gmra.mxu0 %v1821_v11  ;;  %v2932_v11 = vld [vmem:[%s3867_s9 + $0x20] sm:$0xff] }
 0x96d   : > { %2265 = vmatpush.bf16.msra.mxu1 %v2932_v11 }
 0x971   : > { %2266 = vmatpush.bf16.msra.mxu1 %v2931_v29 }
 0x9e9   : > { %v1947_v12 = vpop.f32.mrf.mxu0 }
 0x9ea   : > { %v4137_v16 = vadd.f32 %v1947_v12, %v1841_v14 }
 0x9ec   : > { %v4140_v54 = vmul.f32 0.70710677, %v4137_v16 }
 0x9ee   : > { %v2000_v19 = vmul.f32 %v4140_v54, %v4140_v54 }
 0x9ef   : > { %v1933_v21 = vpop.f32.mrf.mxu3 }
 0x9f0   : > { %v4144_v22 = vmin.f32 %v2000_v19, 16.0  ;;  %v4146_v17 = vadd.f32 %v1933_v21, %v1840_v18  ;;  %v2938_v21 = vld [vmem:[%s3867_s9 + $0x50] sm:$0xff] }
 0x9f1   : > { %v1949_v24 = vpop.f32.mrf.mxu0  ;;  %2281 = vmatpush.bf16.msra.mxu2 %v2938_v21 }
 0x9f2   : > { %v2002_v25 = vmul.f32 2.1237322e-06, %v4144_v22  ;;  %v2013_v26 = vmul.f32 3.8918573e-05, %v4144_v22  ;;  %v4151_v27 = vadd.f32 %v1949_v24, %v1841_v14  ;;  %v4154_v1 = vmul.f32 0.70710677, %v4146_v17 }
 0x9f4   : > { %v2014_v28 = vadd.f32 0.001143296, %v2013_v26  ;;  %v2003_v30 = vadd.f32 0.00028619796, %v2002_v25  ;;  %v1960_v31 = vmul.f32 %v4154_v1, %v4154_v1  ;;  %v4160_v32 = vmul.f32 0.70710677, %v4151_v27 }
 0x9f5   : > { %2282 = vmatpush.bf16.msra.mxu2 %v2937_v34 }
 0x9f6   : > { %v2015_v33 = vmul.f32 %v2014_v28, %v4144_v22  ;;  %v4164_v35 = vmin.f32 %v1960_v31, 16.0  ;;  %v2080_v36 = vmul.f32 %v4160_v32, %v4160_v32  ;;  %v2004_v41 = vmul.f32 %v2003_v30, %v4144_v22 }
 0x9f7   : > { %v1935_v37 = vpop.f32.mrf.mxu3 }
 0x9f8   : > { %v2016_v38 = vadd.f32 0.014752088, %v2015_v33  ;;  %v4168_v39 = vadd.f32 %v1935_v37, %v1840_v18  ;;  %v1973_v42 = vmul.f32 3.8918573e-05, %v4164_v35  ;;  %v4173_v20 = vmin.f32 %v2080_v36, 16.0 }
 0x9f9   : > { %v1962_v46 = vmul.f32 2.1237322e-06, %v4164_v35  ;;  %v2005_v53 = vadd.f32 0.0036580483, %v2004_v41 }
 0x9fa   : > { %v2017_v43 = vmul.f32 %v2016_v38, %v4144_v22  ;;  %v4177_v44 = vmul.f32 0.70710677, %v4168_v39  ;;  %v1974_v48 = vadd.f32 0.001143296, %v1973_v42  ;;  %v2082_v49 = vmul.f32 2.1237322e-06, %v4173_v20 }
 0x9fb   : > { %v2093_v52 = vmul.f32 3.8918573e-05, %v4173_v20  ;;  %v1963_v13 = vadd.f32 0.00028619796, %v1962_v46  ;;  %v2006_v5 = vmul.f32 %v2005_v53, %v4144_v22 }
 0x9fc   : > { %v2018_v51 = vadd.f32 0.112945676, %v2017_v43  ;;  %v2040_v2 = vmul.f32 %v4177_v44, %v4177_v44  ;;  %v1975_v3 = vmul.f32 %v1974_v48, %v4164_v35  ;;  %v2083_v57 = vadd.f32 0.00028619796, %v2082_v49  ;;  %v2930_v43 = vld [vmem:[%s3867_s9 + $0x10] sm:$0xff] }
 0x9fd   : > { %v2094_v58 = vadd.f32 0.001143296, %v2093_v52  ;;  %v1964_v15 = vmul.f32 %v1963_v13, %v4164_v35  ;;  %v2007_v25 = vadd.f32 0.05243302, %v2006_v5  ;;  %2267 = vmatpush.bf16.msra.mxu1 %v2930_v43  ;;  %v2936_v52 = vld [vmem:[%s3867_s9 + $0x40] sm:$0xff] }
 0x9fe   : > { %v2019_v56 = vmul.f32 %v2018_v51, %v4144_v22  ;;  %v4188_v59 = vmin.f32 %v2040_v2, 16.0  ;;  %v1976_v61 = vadd.f32 0.014752088, %v1975_v3  ;;  %v2084_v7 = vmul.f32 %v2083_v57, %v4173_v20  ;;  %2283 = vmatpush.bf16.msra.mxu2 %v2936_v52 }
 0x9ff   : > { %v2095_v62 = vmul.f32 %v2094_v58, %v4173_v20  ;;  %v1965_v30 = vadd.f32 0.0036580483, %v1964_v15  ;;  %v2008_v38 = vmul.f32 %v2007_v25, %v4144_v22 }
 0xa00   : > { %v2020_v10 = vadd.f32 0.4994258, %v2019_v56  ;;  %v1977_v63 = vmul.f32 %v1976_v61, %v4164_v35  ;;  %v2042_v0 = vmul.f32 2.1237322e-06, %v4188_v59  ;;  %v2053_v9 = vmul.f32 3.8918573e-05, %v4188_v59 }
 0xa01   : > { %v2096_v8 = vadd.f32 0.014752088, %v2095_v62  ;;  %v2085_v26 = vadd.f32 0.0036580483, %v2084_v7  ;;  %v1966_v45 = vmul.f32 %v1965_v30, %v4164_v35  ;;  %v2009_v3 = vadd.f32 0.18741608, %v2008_v38 }
 0xa02   : > { %v2021_v6 = vmul.f32 %v2020_v10, %v4144_v22  ;;  %v1978_v14 = vadd.f32 0.112945676, %v1977_v63  ;;  %v2054_v12 = vadd.f32 0.001143296, %v2053_v9  ;;  %v2043_v24 = vadd.f32 0.00028619796, %v2042_v0 }
 0xa03   : > { %v2097_v19 = vmul.f32 %v2096_v8, %v4173_v20  ;;  %v2086_v40 = vmul.f32 %v2085_v26, %v4173_v20  ;;  %v2929_v56 = vld [vmem:[%s3867_s9 + $0x8] sm:$0xff]  ;;  %v1967_v58 = vadd.f32 0.05243302, %v1966_v45  ;;  %v2010_v0 = vmul.f32 %v2009_v3, %v4144_v22 }
 0xa04   : > { %v4201_v18 = vadd.f32 1.0, %v2021_v6  ;;  %v1979_v23 = vmul.f32 %v1978_v14, %v4164_v35  ;;  %v2055_v28 = vmul.f32 %v2054_v12, %v4188_v59  ;;  %v2044_v37 = vmul.f32 %v2043_v24, %v4188_v59  ;;  %2268 = vmatpush.bf16.msra.mxu1 %v2929_v56 }
 0xa05   : > { %v2098_v33 = vadd.f32 0.112945676, %v2097_v19  ;;  %v2087_v55 = vadd.f32 0.05243302, %v2086_v40  ;;  %v1968_v7 = vmul.f32 %v1967_v58, %v4164_v35  ;;  %v2011_v21 = vadd.f32 1.1283791, %v2010_v0 }
 0xa06   : > { %3152 = vrcp.f32 %v4201_v18  ;;  %v1980_v31 = vadd.f32 0.4994258, %v1979_v23  ;;  %v2056_v42 = vadd.f32 0.014752088, %v2055_v28  ;;  %v2045_v53 = vadd.f32 0.0036580483, %v2044_v37 }
 0xa07   : > { %v2099_v41 = vmul.f32 %v2098_v33, %v4173_v20  ;;  %v2088_v9 = vmul.f32 %v2087_v55, %v4173_v20  ;;  %v2034_v8 = vand.u32 2147483648, %v4201_v18  ;;  %vm2028_vm2 = vweird.f32 %v4201_v18 }
 0xa08   : > { %v1981_v36 = vmul.f32 %v1980_v31, %v4164_v35  ;;  %v2057_v51 = vmul.f32 %v2056_v42, %v4188_v59  ;;  %v2046_v62 = vmul.f32 %v2045_v53, %v4188_v59  ;;  %2269 = vmatpush.bf16.msra.mxu1 %v2928_v4  ;;  %v2032_v15 = vand.u32 2147483647, %v4201_v18 }
 0xa09   : > { %v2100_v49 = vadd.f32 0.4994258, %v2099_v41  ;;  %v2089_v19 = vadd.f32 0.18741608, %v2088_v9  ;;  %v1969_v24 = vadd.f32 0.18741608, %v1968_v7 }
 0xa0a   : > { %v4217_v46 = vadd.f32 1.0, %v1981_v36  ;;  %v2058_v13 = vadd.f32 0.112945676, %v2057_v51  ;;  %v2047_v22 = vadd.f32 0.05243302, %v2046_v62  ;;  %v2035_v26 = vor.u32 1.1754944e-38, %v2034_v8 }
 0xa0b   : > { %v2101_v60 = vmul.f32 %v2100_v49, %v4173_v20  ;;  %vm2033_vm4 = vcmp.eq.f32.partialorder %v2032_v15, 8.507059e+37  ;;  %v2012_v36 = vmul.f32 %v2011_v21, %v4140_v54  ;;  %v1970_v37 = vmul.f32 %v1969_v24, %v4164_v35 }
 0xa0c   : > { %v3153_v48 = vpop.eup %3152  ;;  %3154 = vrcp.f32 %v4217_v46  ;;  %v2059_v63 = vmul.f32 %v2058_v13, %v4188_v59  ;;  %v2048_v30 = vmul.f32 %v2047_v22, %v4188_v59  ;;  %vm1988_vm5 = vweird.f32 %v4217_v46 }
 0xa0d   : > { %v2024_v2 = vmul.f32 %v3153_v48, %v4201_v18  ;;  %v4225_v10 = vadd.f32 1.0, %v2101_v60  ;;  %vm2029_vm1 = vweird.f32 %v3153_v48  ;;  %v2090_v18 = vmul.f32 %v2089_v19, %v4173_v20 }
 0xa0e   : > { %v2060_v14 = vadd.f32 0.4994258, %v2059_v63  ;;  %vm2030_vm3 = vmor %vm2028_vm2, %vm2029_vm1  ;;  %v1992_v40 = vand.u32 2147483647, %v4217_v46  ;;  %v1994_v43 = vand.u32 2147483648, %v4217_v46 }
 0xa0f   : > { %v2025_v57 = vsub.f32 1.0, %v2024_v2  ;;  %3156 = vrcp.f32 %v4225_v10  ;;  %v2114_v45 = vand.u32 2147483648, %v4225_v10  ;;  %v2049_v20 = vadd.f32 0.18741608, %v2048_v30 }
 0xa10   : > { %v2061_v25 = vmul.f32 %v2060_v14, %v4188_v59  ;;  %v2112_v54 = vand.u32 2147483647, %v4225_v10  ;;  %v1971_v35 = vadd.f32 1.1283791, %v1970_v37  ;;  %vm1993_vm9 = vcmp.eq.f32.partialorder %v1992_v40, 8.507059e+37 }
 0xa11   : > { %v2026_v61 = vmul.f32 %v3153_v48, %v2025_v57  ;;  %vm2108_vm10 = vweird.f32 %v4225_v10  ;;  %v1995_v55 = vor.u32 1.1754944e-38, %v1994_v43  ;;  %v2115_v56 = vor.u32 1.1754944e-38, %v2114_v45 }
 0xa12   : > { %v3155_v5 = vpop.eup %3154  ;;  %v2062_v31 = vadd.f32 1.0, %v2061_v25  ;;  %v2050_v57 = vmul.f32 %v2049_v20, %v4188_v59  ;;  %vm2113_vm12 = vcmp.eq.f32.partialorder %v2112_v54, 8.507059e+37  ;;  %v1972_v62 = vmul.f32 %v1971_v35, %v4154_v1 }
 0xa13   : > { %v2027_v6 = vadd.f32 %v3153_v48, %v2026_v61  ;;  %v1984_v11 = vmul.f32 %v3155_v5, %v4217_v46  ;;  %vm1989_vm6 = vweird.f32 %v3155_v5  ;;  %v1953_v59 = vmul.f32 0.5, %v4137_v16 }
 0xa14   : > { %3158 = vrcp.f32 %v2062_v31  ;;  %vm4251_vm8 = vmor %vm1988_vm5, %vm1989_vm6  ;;  %v2072_v4 = vand.u32 2147483647, %v2062_v31  ;;  %vm2068_vm14 = vweird.f32 %v2062_v31 }
 0xa15   : > { %v1985_v12 = vsub.f32 1.0, %v1984_v11  ;;  %v2031_v23 = vsel %vm2030_vm3, %v3153_v48, %v2027_v6  ;;  %v3157_v29 = vpop.eup %3156  ;;  %v2091_v48 = vadd.f32 1.1283791, %v2090_v18 }
 0xa16   : > { %v2036_v33 = vsel %vm2033_vm4, %v2035_v26, %v2031_v23  ;;  %v2104_v34 = vmul.f32 %v3157_v29, %v4225_v10  ;;  %vm2109_vm7 = vweird.f32 %v3157_v29  ;;  %v2051_v10 = vadd.f32 1.1283791, %v2050_v57 }
 0xa17   : > { %v1986_v28 = vmul.f32 %v3155_v5, %v1985_v12  ;;  %v2037_v42 = vmul.f32 %v2036_v33, %v2012_v36  ;;  %vm2110_vm11 = vmor %vm2108_vm10, %vm2109_vm7  ;;  %v2092_v46 = vmul.f32 %v2091_v48, %v4160_v32  ;;  %v1955_v32 = vmul.f32 0.5, %v4151_v27  ;;  %v3109_v33 = vld [vmem:[%s848_s11] ss:$0 sm:$0xff] }
 0xa18   : > { %v2105_v41 = vsub.f32 1.0, %v2104_v34  ;;  %v2052_v1 = vmul.f32 %v2051_v10, %v4177_v44  ;;  %vm2073_vm0 = vcmp.eq.f32.partialorder %v2072_v4, 8.507059e+37  ;;  %v1952_v27 = vmul.f32 0.5, %v4146_v17 }
 0xa19   : > { %v1987_v38 = vadd.f32 %v3155_v5, %v1986_v28  ;;  %v2805_v3 = vclamps-f32 %v2037_v42, 1.0  ;;  %v1954_v28 = vmul.f32 0.5, %v4168_v39 }
 0xa1a   : > { %v2106_v49 = vmul.f32 %v3157_v29, %v2105_v41  ;;  %v3159_v53 = vpop.eup %3158 }
 0xa1b   : > { %v1991_v52 = vsel %vm4251_vm8, %v3155_v5, %v1987_v38  ;;  %v2064_v60 = vmul.f32 %v3159_v53, %v2062_v31  ;;  %v2121_v9 = vadd.f32 1.0, %v2805_v3  ;;  %v2074_v5 = vand.u32 2147483648, %v2062_v31 }
 0xa1c   : > { %v2107_v2 = vadd.f32 %v3157_v29, %v2106_v49  ;;  %v1996_v13 = vsel %vm1993_vm9, %v1995_v55, %v1991_v52  ;;  %vm2069_vm13 = vweird.f32 %v3159_v53 }
 0xa1d   : > { %v2065_v0 = vsub.f32 1.0, %v2064_v60  ;;  %v1997_v6 = vmul.f32 %v1996_v13, %v1972_v62  ;;  %v2125_v22 = vmul.f32 %v2121_v9, %v1953_v59  ;;  %vm2070_vm15 = vmor %vm2068_vm14, %vm2069_vm13  ;;  %v2075_v14 = vor.u32 1.1754944e-38, %v2074_v5 }
 0xa1e   : > { %v2111_v58 = vsel %vm2110_vm11, %v3157_v29, %v2107_v2 }
 0xa1f   : > { %v2116_v61 = vsel %vm2113_vm12, %v2115_v56, %v2111_v58  ;;  %v2066_v8 = vmul.f32 %v3159_v53, %v2065_v0  ;;  %v2804_v12 = vclamps-f32 %v1997_v6, 1.0 }
 0xa20   : > { %v2117_v63 = vmul.f32 %v2116_v61, %v2092_v46 }
 0xa21   : > { %v2067_v15 = vadd.f32 %v3159_v53, %v2066_v8  ;;  %v2120_v26 = vadd.f32 1.0, %v2804_v12 }
 0xa22   : > { %v2807_v7 = vclamps-f32 %v2117_v63, 1.0 }
 0xa23   : > { %v2071_v21 = vsel %vm2070_vm15, %v3159_v53, %v2067_v15  ;;  %v2124_v30 = vmul.f32 %v2120_v26, %v1952_v27 }
 0xa24   : > { %v2123_v11 = vadd.f32 1.0, %v2807_v7  ;;  %v2076_v23 = vsel %vm2073_vm0, %v2075_v14, %v2071_v21 }
 0xa25   : > { %v2077_v25 = vmul.f32 %v2076_v23, %v2052_v1 }
 0xa26   : > { %v2127_v19 = vmul.f32 %v2123_v11, %v1955_v32 }
 0xa27   : > { %v2806_v16 = vclamps-f32 %v2077_v25, 1.0 }
 0xa28   : > { %v2129_v24 = vpack.c.bf16 %v2127_v19, %v2125_v22 }
 0xa29   : > { %v2122_v29 = vadd.f32 1.0, %v2806_v16 }
 0xa2a   : > { %2284 = vmatmul.bf16.vlgmr.msra.gmra.mxu2 %v2129_v24 }
 0xa2b   : > { %v2126_v44 = vmul.f32 %v2122_v29, %v1954_v28 }
 0xa2d   : > { %v2128_v31 = vpack.c.bf16 %v2126_v44, %v2124_v30 }
 0xa2f   : > { %2270 = vmatmul.bf16.vlgmr.msra.gmra.mxu1 %v2128_v31 }
 0xaac   : > { %v2271_v18 = vpop.f32.mrf.mxu1 }
 0xaad   : > { %v2285_v34 = vpop.f32.mrf.mxu2  ;;  %v2272_v36 = vadd.f32 %v3109_v33, %v2271_v18 }
 0xaaf   : > { %v2286_v37 = vadd.f32 %v2285_v34, %v2272_v36 }
 0xab1   : > { %v2290_v38 = vadd.f32 %v2286_v37, %v4074_v47 }
 0xab3   : > { %2292 = vst [vmem:[#allocation2] sm:$0xff] %v2290_v38 }
 0xab4   : > { %v2273_v17 = vpop.f32.mrf.mxu1 }
 0xab5   : > { %v2274_v40 = vadd.f32 %v3109_v33, %v2273_v17  ;;  %v2287_v39 = vpop.f32.mrf.mxu2 }
 0xab7   : > { %v2288_v41 = vadd.f32 %v2287_v39, %v2274_v40  ;;  %2297 = sbr.rel (%p2872_p3) target bundleno = 2750 (0xabe), region = 124 }
 0xab9   : > { %v2291_v42 = vadd.f32 %v2288_v41, %v4078_v50 }
 0xabb   : > { %2293 = vst [vmem:[#allocation2 + $0x8] sm:$0xff] %v2291_v42 }
 0xabc   : > { %2298 = vst [vmem:[#allocation16] sm:$0xff] %v2290_v38 }
 0xabd   : > { %2299 = vst [vmem:[#allocation16 + $0x8] sm:$0xff] %v2291_v42 }
 0xabe PF: > { %p3015_p4 = scmp.eq.s32.totalorder %s3673_s19, 1  ;;  %s4366_s11 = sld [smem:[#allocation37_spill]] }
 0xabf   : > { %s3566_s5 = smov [#allocation16]   ;;  %s3567_s14 = smov 128  }
 0xac0   : > { %s2308_s18 = sshll.u32 %s3566_s5, 4  ;;  %s3568_s22 = smov 8   ;;  %s2309_s18 = int_to_ptr.vmem [resolvable:$true] %s2308_s18 }
 0xac4   : > { %s2310_s29 = sshll.u32 %s4366_s11, 4  ;;  %s2311_s29 = int_to_ptr.hbm [resolvable:$true] %s2310_s29 }
 0xac5   : > { %2975 = dma.vmem_to_hbm [thread:$0]  (%p3015_p4), %s2309_s18, 256, %s2311_s29, [#allocation5], %s3567_s14, %s3567_s14, %s3568_s22  }
 0xac6   : > { %3525 = dma.done.wait (%p3015_p4), [#allocation5], 256  }
 0xac7   : > { %3527 = vsyncadd (%p3015_p4), [#allocation5], 4294967040 }
 0xac8 PF: > { %s4367_s21 = sld [smem:[#allocation23_spill]]  ;;  %s4371_s29 = smov %s3534_s30 }
 0xac9   : > { %s4368_s9 = sld [smem:[#allocation21_spill]]  ;;  %s4373_s16 = smov %s3546_s17 }
 0xaca   : > { %s4369_s15 = sld [smem:[#allocation25_spill]] }
 0xacb   : > { %s4370_s19 = sld [smem:[#allocation24_spill]] }
 0xace   : > { %s27_s18 = sadd.s32 1, %s4367_s21  }
 0xacf   : > { %p24_p5 = scmp.ge.s32.totalorder %s27_s18, 4   ;;  %s4372_s30 = smov %s4368_s9 }
 0xad1   : > { %s4374_s17 = smov %s4370_s19  ;;  %26 = sbr.rel (!%p24_p5) target bundleno = 18 (0x12), region = 220 }
 0xad6   :  { %2327 = vsyncpa [#allocation4], 1 }
 0xad7   :  { %2329 = vsyncpa [#allocation4 + $0x1], 1 }
 0xad8   :  { %2330 = vsyncpa [#allocation7], 1 }
 0xad9   :  { %2331 = vsyncpa [#allocation5], 1 }
 0xada   :  { %2333 = vsyncpa [#allocation5 + $0x1], 1 }

</bundles_post_ra>
